<compile_context>
chip_gen: v7x
topology: tpu7x:2x2x1
jax: 0.10.0
libtpu: 0.0.40
codegen_flags: <defaults>
</compile_context>

<pallas_src>
import functools

import jax
import jax.numpy as jnp
from jax import lax
from jax.experimental import pallas as pl
from jax.experimental.pallas import tpu as pltpu


def _round_up(n, m):
    return ((n + m - 1) // m) * m


def _num_tensorcores_per_chip():
    """2 TensorCores per chip on v7x, 1 on v5e/v6e (generation-aware tiling)."""
    try:
        kind = jax.devices()[0].device_kind.lower()
        return 2 if "v7" in kind else 1
    except Exception:  # defensive: unknown backend -> single tile
        return 1


def _make_const_spec_factory():
    """BlockSpec factory for grid-constant weight/bias tiles.

    Uses pipeline_mode=pl.Buffered(1): their index_map is constant across the
    grid, so default double-buffering would only waste VMEM. Falls back to a
    plain BlockSpec if this jax does not accept the argument.
    """
    try:
        buffered_one = pl.Buffered(1)

        def make(shape):
            return pl.BlockSpec(shape, lambda *_: (0,) * len(shape),
                                pipeline_mode=buffered_one)

        make((8, 128))  # probe construction
        return make, 1
    except Exception:
        def make(shape):
            return pl.BlockSpec(shape, lambda *_: (0,) * len(shape))

        return make, 2


_const_spec, _WEIGHT_BUFFERS = _make_const_spec_factory()

_UNROLL_T_MAX = 32  # fully unroll the time loop only for short sequences


# ----------------------------------------------------------------------------
# Fused Pallas kernel: all RNN layers + classifier head
# ----------------------------------------------------------------------------
def _fused_rnn_kernel_factory(num_layers, T, TB):
    """Builds the fused kernel for static (num_layers, T, batch-tile)."""

    def kernel(*refs):
        # refs = [x, (w_ih_t, w_hh_t, b) * L, w_cls_t, b_cls, out, slab]
        x_ref = refs[0]
        lrefs = refs[1:1 + 3 * num_layers]
        w_cls_ref = refs[1 + 3 * num_layers]
        b_cls_ref = refs[2 + 3 * num_layers]
        o_ref = refs[3 + 3 * num_layers]
        slab = refs[4 + 3 * num_layers]   # (T*TB, H) aliased z / hidden-seq slab

        H = slab.shape[1]
        D = x_ref.shape[-1]

        h_last = jnp.zeros((TB, H), jnp.float32)
        for layer in range(num_layers):
            w_ih_t = lrefs[3 * layer][...]       # (Din, H) compute dtype
            w_hh_t = lrefs[3 * layer + 1][...]   # (H,  H)  compute dtype
            b = lrefs[3 * layer + 2][...]        # (1,  H)  f32 (b_ih + b_hh)

            if layer == 0:
                # Flatten (T, TB, D) -> lane-dense (T*TB, D) slab.
                cur_in = x_ref[...].reshape(T * TB, D).astype(w_ih_t.dtype)
            else:
                # Previous layer's hidden sequence lives in the slab; read it
                # fully BEFORE overwriting it with this layer's projection.
                cur_in = slab[...].astype(w_ih_t.dtype)

            # Hoisted input projection: ONE well-shaped MXU matmul for the
            # whole sequence (f32 accumulation), bias added once.
            slab[...] = (
                jnp.dot(cur_in, w_ih_t, preferred_element_type=jnp.float32)
                + b)

            last_layer = layer == num_layers - 1

            def step(t, h, *, _w_hh_t=w_hh_t, _last=last_layer):
                row = t * TB
                if not isinstance(row, int):
                    row = pl.multiple_of(row, 8)
                # TODO(synk): weight-stationary matmul_push_rhs/acc_lhs/pop.
                z = slab[pl.ds(row, TB), :] + jnp.dot(
                    h.astype(_w_hh_t.dtype), _w_hh_t,
                    preferred_element_type=jnp.float32)
                h = jnp.tanh(z)                  # f32 tanh, f32 carried state
                if not _last:
                    slab[pl.ds(row, TB), :] = h  # row consumed above -> safe
                return h

            h = jnp.zeros((TB, H), jnp.float32)
            if T <= _UNROLL_T_MAX:
                for t in range(T):               # static slices, full unroll
                    h = step(t, h)
            else:
                # Partial unroll: LLO visibility without exploding live ranges.
                h = lax.fori_loop(0, T, step, h, unroll=8)
            h_last = h

        # Fused classifier head on the final hidden state (lane-padded O).
        o_ref[...] = (
            jnp.dot(h_last.astype(w_cls_ref.dtype), w_cls_ref[...],
                    preferred_element_type=jnp.float32)
            + b_cls_ref[...]
        ).astype(o_ref.dtype)

    return kernel


def _fused_forward(x_pad_tmajor, prepared, TB, core_parallel):
    """x_pad_tmajor: (T, B_pad, D_pad) -> (B_pad, O_pad)."""
    T, B_pad, D_pad = x_pad_tmajor.shape
    num_layers = len(prepared["layers"])
    H_pad = prepared["layers"][0]["w_hh_t"].shape[0]
    O_pad = prepared["w_cls_t"].shape[1]
    grid = (B_pad // TB,)

    in_specs = [pl.BlockSpec((T, TB, D_pad), lambda i: (0, i, 0))]
    inputs = [x_pad_tmajor]
    for lp in prepared["layers"]:
        Din = lp["w_ih_t"].shape[0]
        in_specs += [
            _const_spec((Din, H_pad)),
            _const_spec((H_pad, H_pad)),
            _const_spec((1, H_pad)),
        ]
        inputs += [lp["w_ih_t"], lp["w_hh_t"], lp["b"]]
    in_specs += [_const_spec((H_pad, O_pad)), _const_spec((1, O_pad))]
    inputs += [prepared["w_cls_t"], prepared["b_cls"]]

    # Explicit VMEM budget from the computed footprint (+25% headroom).
    weight_bytes = sum(int(a.size) * a.dtype.itemsize for a in inputs[1:])
    est = (weight_bytes * _WEIGHT_BUFFERS
           + 2 * T * TB * D_pad * x_pad_tmajor.dtype.itemsize   # x (2 bufs)
           + 2 * TB * O_pad * 4                                 # out (2 bufs)
           + T * TB * H_pad * 4)                                 # aliased slab
    vmem_limit = int(min(max(est * 5 // 4 + (1 << 20), 4 << 20), 128 << 20))

    dims = (pltpu.CORE_PARALLEL,) if core_parallel else ("arbitrary",)

    kernel = _fused_rnn_kernel_factory(num_layers, T, TB)

    return pl.pallas_call(
        kernel,
        out_shape=jax.ShapeDtypeStruct((B_pad, O_pad), jnp.float32),
        grid=grid,
        in_specs=in_specs,
        out_specs=pl.BlockSpec((TB, O_pad), lambda i: (i, 0)),
        scratch_shapes=[
            # Single aliased slab: input-projection z AND hidden sequence.
            pltpu.VMEM((T * TB, H_pad), jnp.float32),
        ],
        compiler_params=pltpu.CompilerParams(
            dimension_semantics=dims,
            vmem_limit_bytes=vmem_limit,
        ),
    )(*inputs)


# ----------------------------------------------------------------------------
# Parameter preparation (once, outside the jitted forward)
# ----------------------------------------------------------------------------
def prepare_params(params, compute_dtype=jnp.bfloat16):
    """Transpose, pad to (8,128) granularity, fuse biases, cast for the MXU.

    bf16 weights by default (halved HBM->VMEM DMA / VMEM residency, bf16 MXU
    fast path); biases stay f32 and the kernel accumulates / carries h in f32.
    """
    hidden_dims = {lp["w_hh"].shape[0] for lp in params["rnn_layers"]}
    assert len(hidden_dims) == 1, "all RNN layers must share one hidden width"

    layers = []
    for lp in params["rnn_layers"]:
        H, Din = lp["w_ih"].shape
        H_pad = _round_up(H, 128)
        D_pad = _round_up(Din, 128)
        w_ih_t = jnp.zeros((D_pad, H_pad), compute_dtype).at[:Din, :H].set(
            lp["w_ih"].T.astype(compute_dtype))
        w_hh_t = jnp.zeros((H_pad, H_pad), compute_dtype).at[:H, :H].set(
            lp["w_hh"].T.astype(compute_dtype))
        b = jnp.zeros((1, H_pad), jnp.float32).at[0, :H].set(
            lp["b_ih"].astype(jnp.float32) + lp["b_hh"].astype(jnp.float32))
        layers.append({"w_ih_t": w_ih_t, "w_hh_t": w_hh_t, "b": b})

    O, H = params["w_cls"].shape
    H_pad = _round_up(H, 128)
    O_pad = _round_up(O, 128)
    w_cls_t = jnp.zeros((H_pad, O_pad), compute_dtype).at[:H, :O].set(
        params["w_cls"].T.astype(compute_dtype))
    b_cls = jnp.zeros((1, O_pad), jnp.float32).at[0, :O].set(
        params["b_cls"].astype(jnp.float32))
    return {"layers": layers, "w_cls_t": w_cls_t, "b_cls": b_cls}


# ----------------------------------------------------------------------------
# Forward wrapper (mirrors RNN.forward)
# ----------------------------------------------------------------------------
@functools.partial(jax.jit, static_argnames=("batch_size", "out_features"))
def rnn_forward(x, prepared, batch_size, out_features):
    """x: (B, T, input_dim) batch-first -> (batch_size, -1)."""
    B, T, D = x.shape
    assert T >= 1, "sequence length must be >= 1"
    D_pad = prepared["layers"][0]["w_ih_t"].shape[0]
    compute_dtype = prepared["layers"][0]["w_ih_t"].dtype

    # Generation-aware batch tiling: the grid is a serial loop on 1-TC chips
    # (v5e/v6e) -> a single bigger tile; on v7x give each TensorCore one tile.
    num_tc = _num_tensorcores_per_chip()
    B_pad8 = _round_up(B, 8)
    if num_tc >= 2 and B_pad8 > 8:
        TB = _round_up((B_pad8 + 1) // 2, 8)
        B_pad = 2 * TB
        core_parallel = True
    else:
        TB = B_pad = B_pad8
        core_parallel = False

    # Cast BEFORE the transpose/pad HBM pass (halves traffic on the bf16 path).
    x_t = jnp.transpose(x.astype(compute_dtype), (1, 0, 2))       # (T, B, D)
    x_t = jnp.pad(x_t, ((0, 0), (0, B_pad - B), (0, D_pad - D)))

    out_pad = _fused_forward(x_t, prepared, TB, core_parallel)    # (B_pad, O_pad)
    out = out_pad[:B, :out_features]
    return out.reshape(batch_size, -1)


# ----------------------------------------------------------------------------
# Pure-JAX reference (mirrors the PyTorch semantics) for verification
# ----------------------------------------------------------------------------
def rnn_forward_ref(x, params, batch_size):
    h_seq = jnp.transpose(x, (1, 0, 2))
    for lp in params["rnn_layers"]:
        T, B, _ = h_seq.shape
        H = lp["w_hh"].shape[0]
        h = jnp.zeros((B, H), jnp.float32)
        outs = []
        for t in range(T):
            h = jnp.tanh(h_seq[t] @ lp["w_ih"].T + lp["b_ih"]
                         + h @ lp["w_hh"].T + lp["b_hh"])
            outs.append(h)
        h_seq = jnp.stack(outs, axis=0)
    h_last = h_seq[-1]
    out = h_last @ params["w_cls"].T + params["b_cls"]
    return out.reshape(batch_size, -1)


# ----------------------------------------------------------------------------
# Deterministic parameter init (PyTorch-style uniform(-1/sqrt(H), 1/sqrt(H)))
# ----------------------------------------------------------------------------
def init_params(key, input_dim, hidden_dim, output_length, num_layers,
                batch_size):
    k = 1.0 / jnp.sqrt(hidden_dim)
    layers = []
    for layer in range(num_layers):
        in_dim = input_dim if layer == 0 else hidden_dim
        key, k1, k2, k3, k4 = jax.random.split(key, 5)
        layers.append({
            "w_ih": jax.random.uniform(k1, (hidden_dim, in_dim),
                                       jnp.float32, -k, k),
            "w_hh": jax.random.uniform(k2, (hidden_dim, hidden_dim),
                                       jnp.float32, -k, k),
            "b_ih": jax.random.uniform(k3, (hidden_dim,),
                                       jnp.float32, -k, k),
            "b_hh": jax.random.uniform(k4, (hidden_dim,),
                                       jnp.float32, -k, k),
        })
    out_features = output_length * batch_size
    key, k5, k6 = jax.random.split(key, 3)
    return {
        "rnn_layers": layers,
        "w_cls": jax.random.uniform(k5, (out_features, hidden_dim),
                                    jnp.float32, -k, k),
        "b_cls": jax.random.uniform(k6, (out_features,),
                                    jnp.float32, -k, k),
    }


# ----------------------------------------------------------------------------
if __name__ == "__main__":
    input_dim = 8
    hidden_dim = 32
    output_length = 6
    num_layers = 2
    batch_size = 4
    seq_len = 8

    root = jax.random.PRNGKey(0)
    kx, kp = jax.random.split(root)
    x = jax.random.normal(kx, (batch_size, seq_len, input_dim), jnp.float32)
    params = init_params(kp, input_dim, hidden_dim, output_length,
                         num_layers, batch_size)
    out_features = output_length * batch_size

    ref = rnn_forward_ref(x, params, batch_size)

    # f32 path: tight tolerance vs the PyTorch-equivalent reference.
    prepared_f32 = prepare_params(params, jnp.float32)
    out = jax.block_until_ready(
        rnn_forward(x, prepared_f32, batch_size, out_features))
    assert out.shape == (batch_size, out_features), out.shape
    assert jnp.allclose(out, ref, atol=1e-5, rtol=1e-5), \
        "Pallas f32 output mismatch vs reference"

    # Default (bf16 MXU weights, f32 accumulation + f32 tanh): loose tolerance.
    prepared_bf16 = prepare_params(params)
    out_bf16 = jax.block_until_ready(
        rnn_forward(x, prepared_bf16, batch_size, out_features))
    assert out_bf16.shape == (batch_size, out_features)
    assert jnp.allclose(out_bf16, ref, atol=1e-1, rtol=1e-1), \
        "Pallas bf16 output mismatch vs reference"

    print("KERNEL_OK")
</pallas_src>

<mosaic_0001>
module attributes {stable_mosaic.version = 11 : i64} {
  func.func @kernel(%arg0: i32, %arg1: memref<8x8x128xf32, #tpu.memory_space<vmem>>, %arg2: memref<128x128xf32, #tpu.memory_space<vmem>>, %arg3: memref<128x128xf32, #tpu.memory_space<vmem>>, %arg4: memref<1x128xf32, #tpu.memory_space<vmem>>, %arg5: memref<128x128xf32, #tpu.memory_space<vmem>>, %arg6: memref<128x128xf32, #tpu.memory_space<vmem>>, %arg7: memref<1x128xf32, #tpu.memory_space<vmem>>, %arg8: memref<128x128xf32, #tpu.memory_space<vmem>>, %arg9: memref<1x128xf32, #tpu.memory_space<vmem>>, %arg10: memref<8x128xf32, #tpu.memory_space<vmem>>, %arg11: memref<64x128xf32, #tpu.memory_space<vmem>>) attributes {dimension_semantics = [#tpu.dimension_semantics<arbitrary>], iteration_bounds = array<i64: 1>, scalar_prefetch = 0 : i64, scratch_operands = 1 : i64, tpu.core_type = #tpu.core_type<tc>, window_params = [{transform_indices = @transform_0, window_bounds = array<i64: 8, 8, 128>}, {pipeline_mode = #tpu.pipeline_mode<synchronous>, transform_indices = @transform_1, window_bounds = array<i64: 128, 128>}, {pipeline_mode = #tpu.pipeline_mode<synchronous>, transform_indices = @transform_2, window_bounds = array<i64: 128, 128>}, {pipeline_mode = #tpu.pipeline_mode<synchronous>, transform_indices = @transform_3, window_bounds = array<i64: 1, 128>}, {pipeline_mode = #tpu.pipeline_mode<synchronous>, transform_indices = @transform_4, window_bounds = array<i64: 128, 128>}, {pipeline_mode = #tpu.pipeline_mode<synchronous>, transform_indices = @transform_5, window_bounds = array<i64: 128, 128>}, {pipeline_mode = #tpu.pipeline_mode<synchronous>, transform_indices = @transform_6, window_bounds = array<i64: 1, 128>}, {pipeline_mode = #tpu.pipeline_mode<synchronous>, transform_indices = @transform_7, window_bounds = array<i64: 128, 128>}, {pipeline_mode = #tpu.pipeline_mode<synchronous>, transform_indices = @transform_8, window_bounds = array<i64: 1, 128>}, {transform_indices = @transform_9, window_bounds = array<i64: 8, 128>}]} {
    %c0 = arith.constant 0 : index
    %c0_0 = arith.constant 0 : index
    %0 = vector.load %arg2[%c0, %c0_0] : memref<128x128xf32, #tpu.memory_space<vmem>>, vector<128x128xf32>
    %c0_1 = arith.constant 0 : index
    %c0_2 = arith.constant 0 : index
    %1 = vector.load %arg3[%c0_1, %c0_2] : memref<128x128xf32, #tpu.memory_space<vmem>>, vector<128x128xf32>
    %c0_3 = arith.constant 0 : index
    %c0_4 = arith.constant 0 : index
    %2 = vector.load %arg4[%c0_3, %c0_4] : memref<1x128xf32, #tpu.memory_space<vmem>>, vector<1x128xf32>
    %c0_5 = arith.constant 0 : index
    %c0_6 = arith.constant 0 : index
    %c0_7 = arith.constant 0 : index
    %3 = vector.load %arg1[%c0_5, %c0_6, %c0_7] : memref<8x8x128xf32, #tpu.memory_space<vmem>>, vector<8x8x128xf32>
    %4 = vector.shape_cast %3 : vector<8x8x128xf32> to vector<64x128xf32>
    %cst = arith.constant dense<0.000000e+00> : vector<64x128xf32>
    %5 = tpu.matmul %4, %0, %cst {dimension_numbers = #tpu.dot_dimension_numbers<[1], [0], [0], [1], [0, 0, 1, 1], [], []>} : vector<64x128xf32>, vector<128x128xf32>, vector<64x128xf32> -> vector<64x128xf32>
    %6 = vector.broadcast %2 : vector<1x128xf32> to vector<64x128xf32>
    %7 = arith.addf %5, %6 : vector<64x128xf32>
    %c0_8 = arith.constant 0 : index
    %c0_9 = arith.constant 0 : index
    %8 = vector.load %arg11[%c0_8, %c0_9] : memref<64x128xf32, #tpu.memory_space<vmem>>, vector<64x128xf32>
    tpu.vector_store %arg11[%c0_8, %c0_9], %7 {strides = array<i32>} : memref<64x128xf32, #tpu.memory_space<vmem>>, vector<64x128xf32>,
    %cst_10 = arith.constant 0.000000e+00 : f32
    %9 = vector.broadcast %cst_10 : f32 to vector<8x128xf32>
    %c0_11 = arith.constant 0 : index
    %c0_12 = arith.constant 0 : index
    %10 = vector.load %arg11[%c0_11, %c0_12] : memref<64x128xf32, #tpu.memory_space<vmem>>, vector<8x128xf32>
    %cst_13 = arith.constant dense<0.000000e+00> : vector<8x128xf32>
    %11 = tpu.matmul %9, %1, %cst_13 {dimension_numbers = #tpu.dot_dimension_numbers<[1], [0], [0], [1], [0, 0, 1, 1], [], []>} : vector<8x128xf32>, vector<128x128xf32>, vector<8x128xf32> -> vector<8x128xf32>
    %12 = arith.addf %10, %11 : vector<8x128xf32>
    %13 = math.tanh %12 : vector<8x128xf32>
    %c0_14 = arith.constant 0 : index
    %c0_15 = arith.constant 0 : index
    %14 = vector.load %arg11[%c0_14, %c0_15] : memref<64x128xf32, #tpu.memory_space<vmem>>, vector<8x128xf32>
    tpu.vector_store %arg11[%c0_14, %c0_15], %13 {strides = array<i32>} : memref<64x128xf32, #tpu.memory_space<vmem>>, vector<8x128xf32>,
    %c8 = arith.constant 8 : index
    %c0_16 = arith.constant 0 : index
    %15 = vector.load %arg11[%c8, %c0_16] : memref<64x128xf32, #tpu.memory_space<vmem>>, vector<8x128xf32>
    %cst_17 = arith.constant dense<0.000000e+00> : vector<8x128xf32>
    %16 = tpu.matmul %13, %1, %cst_17 {dimension_numbers = #tpu.dot_dimension_numbers<[1], [0], [0], [1], [0, 0, 1, 1], [], []>} : vector<8x128xf32>, vector<128x128xf32>, vector<8x128xf32> -> vector<8x128xf32>
    %17 = arith.addf %15, %16 : vector<8x128xf32>
    %18 = math.tanh %17 : vector<8x128xf32>
    %c8_18 = arith.constant 8 : index
    %c0_19 = arith.constant 0 : index
    %19 = vector.load %arg11[%c8_18, %c0_19] : memref<64x128xf32, #tpu.memory_space<vmem>>, vector<8x128xf32>
    tpu.vector_store %arg11[%c8_18, %c0_19], %18 {strides = array<i32>} : memref<64x128xf32, #tpu.memory_space<vmem>>, vector<8x128xf32>,
    %c16 = arith.constant 16 : index
    %c0_20 = arith.constant 0 : index
    %20 = vector.load %arg11[%c16, %c0_20] : memref<64x128xf32, #tpu.memory_space<vmem>>, vector<8x128xf32>
    %cst_21 = arith.constant dense<0.000000e+00> : vector<8x128xf32>
    %21 = tpu.matmul %18, %1, %cst_21 {dimension_numbers = #tpu.dot_dimension_numbers<[1], [0], [0], [1], [0, 0, 1, 1], [], []>} : vector<8x128xf32>, vector<128x128xf32>, vector<8x128xf32> -> vector<8x128xf32>
    %22 = arith.addf %20, %21 : vector<8x128xf32>
    %23 = math.tanh %22 : vector<8x128xf32>
    %c16_22 = arith.constant 16 : index
    %c0_23 = arith.constant 0 : index
    %24 = vector.load %arg11[%c16_22, %c0_23] : memref<64x128xf32, #tpu.memory_space<vmem>>, vector<8x128xf32>
    tpu.vector_store %arg11[%c16_22, %c0_23], %23 {strides = array<i32>} : memref<64x128xf32, #tpu.memory_space<vmem>>, vector<8x128xf32>,
    %c24 = arith.constant 24 : index
    %c0_24 = arith.constant 0 : index
    %25 = vector.load %arg11[%c24, %c0_24] : memref<64x128xf32, #tpu.memory_space<vmem>>, vector<8x128xf32>
    %cst_25 = arith.constant dense<0.000000e+00> : vector<8x128xf32>
    %26 = tpu.matmul %23, %1, %cst_25 {dimension_numbers = #tpu.dot_dimension_numbers<[1], [0], [0], [1], [0, 0, 1, 1], [], []>} : vector<8x128xf32>, vector<128x128xf32>, vector<8x128xf32> -> vector<8x128xf32>
    %27 = arith.addf %25, %26 : vector<8x128xf32>
    %28 = math.tanh %27 : vector<8x128xf32>
    %c24_26 = arith.constant 24 : index
    %c0_27 = arith.constant 0 : index
    %29 = vector.load %arg11[%c24_26, %c0_27] : memref<64x128xf32, #tpu.memory_space<vmem>>, vector<8x128xf32>
    tpu.vector_store %arg11[%c24_26, %c0_27], %28 {strides = array<i32>} : memref<64x128xf32, #tpu.memory_space<vmem>>, vector<8x128xf32>,
    %c32 = arith.constant 32 : index
    %c0_28 = arith.constant 0 : index
    %30 = vector.load %arg11[%c32, %c0_28] : memref<64x128xf32, #tpu.memory_space<vmem>>, vector<8x128xf32>
    %cst_29 = arith.constant dense<0.000000e+00> : vector<8x128xf32>
    %31 = tpu.matmul %28, %1, %cst_29 {dimension_numbers = #tpu.dot_dimension_numbers<[1], [0], [0], [1], [0, 0, 1, 1], [], []>} : vector<8x128xf32>, vector<128x128xf32>, vector<8x128xf32> -> vector<8x128xf32>
    %32 = arith.addf %30, %31 : vector<8x128xf32>
    %33 = math.tanh %32 : vector<8x128xf32>
    %c32_30 = arith.constant 32 : index
    %c0_31 = arith.constant 0 : index
    %34 = vector.load %arg11[%c32_30, %c0_31] : memref<64x128xf32, #tpu.memory_space<vmem>>, vector<8x128xf32>
    tpu.vector_store %arg11[%c32_30, %c0_31], %33 {strides = array<i32>} : memref<64x128xf32, #tpu.memory_space<vmem>>, vector<8x128xf32>,
    %c40 = arith.constant 40 : index
    %c0_32 = arith.constant 0 : index
    %35 = vector.load %arg11[%c40, %c0_32] : memref<64x128xf32, #tpu.memory_space<vmem>>, vector<8x128xf32>
    %cst_33 = arith.constant dense<0.000000e+00> : vector<8x128xf32>
    %36 = tpu.matmul %33, %1, %cst_33 {dimension_numbers = #tpu.dot_dimension_numbers<[1], [0], [0], [1], [0, 0, 1, 1], [], []>} : vector<8x128xf32>, vector<128x128xf32>, vector<8x128xf32> -> vector<8x128xf32>
    %37 = arith.addf %35, %36 : vector<8x128xf32>
    %38 = math.tanh %37 : vector<8x128xf32>
    %c40_34 = arith.constant 40 : index
    %c0_35 = arith.constant 0 : index
    %39 = vector.load %arg11[%c40_34, %c0_35] : memref<64x128xf32, #tpu.memory_space<vmem>>, vector<8x128xf32>
    tpu.vector_store %arg11[%c40_34, %c0_35], %38 {strides = array<i32>} : memref<64x128xf32, #tpu.memory_space<vmem>>, vector<8x128xf32>,
    %c48 = arith.constant 48 : index
    %c0_36 = arith.constant 0 : index
    %40 = vector.load %arg11[%c48, %c0_36] : memref<64x128xf32, #tpu.memory_space<vmem>>, vector<8x128xf32>
    %cst_37 = arith.constant dense<0.000000e+00> : vector<8x128xf32>
    %41 = tpu.matmul %38, %1, %cst_37 {dimension_numbers = #tpu.dot_dimension_numbers<[1], [0], [0], [1], [0, 0, 1, 1], [], []>} : vector<8x128xf32>, vector<128x128xf32>, vector<8x128xf32> -> vector<8x128xf32>
    %42 = arith.addf %40, %41 : vector<8x128xf32>
    %43 = math.tanh %42 : vector<8x128xf32>
    %c48_38 = arith.constant 48 : index
    %c0_39 = arith.constant 0 : index
    %44 = vector.load %arg11[%c48_38, %c0_39] : memref<64x128xf32, #tpu.memory_space<vmem>>, vector<8x128xf32>
    tpu.vector_store %arg11[%c48_38, %c0_39], %43 {strides = array<i32>} : memref<64x128xf32, #tpu.memory_space<vmem>>, vector<8x128xf32>,
    %c56 = arith.constant 56 : index
    %c0_40 = arith.constant 0 : index
    %45 = vector.load %arg11[%c56, %c0_40] : memref<64x128xf32, #tpu.memory_space<vmem>>, vector<8x128xf32>
    %cst_41 = arith.constant dense<0.000000e+00> : vector<8x128xf32>
    %46 = tpu.matmul %43, %1, %cst_41 {dimension_numbers = #tpu.dot_dimension_numbers<[1], [0], [0], [1], [0, 0, 1, 1], [], []>} : vector<8x128xf32>, vector<128x128xf32>, vector<8x128xf32> -> vector<8x128xf32>
    %47 = arith.addf %45, %46 : vector<8x128xf32>
    %48 = math.tanh %47 : vector<8x128xf32>
    %c56_42 = arith.constant 56 : index
    %c0_43 = arith.constant 0 : index
    %49 = vector.load %arg11[%c56_42, %c0_43] : memref<64x128xf32, #tpu.memory_space<vmem>>, vector<8x128xf32>
    tpu.vector_store %arg11[%c56_42, %c0_43], %48 {strides = array<i32>} : memref<64x128xf32, #tpu.memory_space<vmem>>, vector<8x128xf32>,
    %c0_44 = arith.constant 0 : index
    %c0_45 = arith.constant 0 : index
    %50 = vector.load %arg5[%c0_44, %c0_45] : memref<128x128xf32, #tpu.memory_space<vmem>>, vector<128x128xf32>
    %c0_46 = arith.constant 0 : index
    %c0_47 = arith.constant 0 : index
    %51 = vector.load %arg6[%c0_46, %c0_47] : memref<128x128xf32, #tpu.memory_space<vmem>>, vector<128x128xf32>
    %c0_48 = arith.constant 0 : index
    %c0_49 = arith.constant 0 : index
    %52 = vector.load %arg7[%c0_48, %c0_49] : memref<1x128xf32, #tpu.memory_space<vmem>>, vector<1x128xf32>
    %c0_50 = arith.constant 0 : index
    %c0_51 = arith.constant 0 : index
    %53 = vector.load %arg11[%c0_50, %c0_51] : memref<64x128xf32, #tpu.memory_space<vmem>>, vector<64x128xf32>
    %cst_52 = arith.constant dense<0.000000e+00> : vector<64x128xf32>
    %54 = tpu.matmul %53, %50, %cst_52 {dimension_numbers = #tpu.dot_dimension_numbers<[1], [0], [0], [1], [0, 0, 1, 1], [], []>} : vector<64x128xf32>, vector<128x128xf32>, vector<64x128xf32> -> vector<64x128xf32>
    %55 = vector.broadcast %52 : vector<1x128xf32> to vector<64x128xf32>
    %56 = arith.addf %54, %55 : vector<64x128xf32>
    %c0_53 = arith.constant 0 : index
    %c0_54 = arith.constant 0 : index
    %57 = vector.load %arg11[%c0_53, %c0_54] : memref<64x128xf32, #tpu.memory_space<vmem>>, vector<64x128xf32>
    tpu.vector_store %arg11[%c0_53, %c0_54], %56 {strides = array<i32>} : memref<64x128xf32, #tpu.memory_space<vmem>>, vector<64x128xf32>,
    %cst_55 = arith.constant 0.000000e+00 : f32
    %58 = vector.broadcast %cst_55 : f32 to vector<8x128xf32>
    %c0_56 = arith.constant 0 : index
    %c0_57 = arith.constant 0 : index
    %59 = vector.load %arg11[%c0_56, %c0_57] : memref<64x128xf32, #tpu.memory_space<vmem>>, vector<8x128xf32>
    %cst_58 = arith.constant dense<0.000000e+00> : vector<8x128xf32>
    %60 = tpu.matmul %58, %51, %cst_58 {dimension_numbers = #tpu.dot_dimension_numbers<[1], [0], [0], [1], [0, 0, 1, 1], [], []>} : vector<8x128xf32>, vector<128x128xf32>, vector<8x128xf32> -> vector<8x128xf32>
    %61 = arith.addf %59, %60 : vector<8x128xf32>
    %62 = math.tanh %61 : vector<8x128xf32>
    %c8_59 = arith.constant 8 : index
    %c0_60 = arith.constant 0 : index
    %63 = vector.load %arg11[%c8_59, %c0_60] : memref<64x128xf32, #tpu.memory_space<vmem>>, vector<8x128xf32>
    %cst_61 = arith.constant dense<0.000000e+00> : vector<8x128xf32>
    %64 = tpu.matmul %62, %51, %cst_61 {dimension_numbers = #tpu.dot_dimension_numbers<[1], [0], [0], [1], [0, 0, 1, 1], [], []>} : vector<8x128xf32>, vector<128x128xf32>, vector<8x128xf32> -> vector<8x128xf32>
    %65 = arith.addf %63, %64 : vector<8x128xf32>
    %66 = math.tanh %65 : vector<8x128xf32>
    %c16_62 = arith.constant 16 : index
    %c0_63 = arith.constant 0 : index
    %67 = vector.load %arg11[%c16_62, %c0_63] : memref<64x128xf32, #tpu.memory_space<vmem>>, vector<8x128xf32>
    %cst_64 = arith.constant dense<0.000000e+00> : vector<8x128xf32>
    %68 = tpu.matmul %66, %51, %cst_64 {dimension_numbers = #tpu.dot_dimension_numbers<[1], [0], [0], [1], [0, 0, 1, 1], [], []>} : vector<8x128xf32>, vector<128x128xf32>, vector<8x128xf32> -> vector<8x128xf32>
    %69 = arith.addf %67, %68 : vector<8x128xf32>
    %70 = math.tanh %69 : vector<8x128xf32>
    %c24_65 = arith.constant 24 : index
    %c0_66 = arith.constant 0 : index
    %71 = vector.load %arg11[%c24_65, %c0_66] : memref<64x128xf32, #tpu.memory_space<vmem>>, vector<8x128xf32>
    %cst_67 = arith.constant dense<0.000000e+00> : vector<8x128xf32>
    %72 = tpu.matmul %70, %51, %cst_67 {dimension_numbers = #tpu.dot_dimension_numbers<[1], [0], [0], [1], [0, 0, 1, 1], [], []>} : vector<8x128xf32>, vector<128x128xf32>, vector<8x128xf32> -> vector<8x128xf32>
    %73 = arith.addf %71, %72 : vector<8x128xf32>
    %74 = math.tanh %73 : vector<8x128xf32>
    %c32_68 = arith.constant 32 : index
    %c0_69 = arith.constant 0 : index
    %75 = vector.load %arg11[%c32_68, %c0_69] : memref<64x128xf32, #tpu.memory_space<vmem>>, vector<8x128xf32>
    %cst_70 = arith.constant dense<0.000000e+00> : vector<8x128xf32>
    %76 = tpu.matmul %74, %51, %cst_70 {dimension_numbers = #tpu.dot_dimension_numbers<[1], [0], [0], [1], [0, 0, 1, 1], [], []>} : vector<8x128xf32>, vector<128x128xf32>, vector<8x128xf32> -> vector<8x128xf32>
    %77 = arith.addf %75, %76 : vector<8x128xf32>
    %78 = math.tanh %77 : vector<8x128xf32>
    %c40_71 = arith.constant 40 : index
    %c0_72 = arith.constant 0 : index
    %79 = vector.load %arg11[%c40_71, %c0_72] : memref<64x128xf32, #tpu.memory_space<vmem>>, vector<8x128xf32>
    %cst_73 = arith.constant dense<0.000000e+00> : vector<8x128xf32>
    %80 = tpu.matmul %78, %51, %cst_73 {dimension_numbers = #tpu.dot_dimension_numbers<[1], [0], [0], [1], [0, 0, 1, 1], [], []>} : vector<8x128xf32>, vector<128x128xf32>, vector<8x128xf32> -> vector<8x128xf32>
    %81 = arith.addf %79, %80 : vector<8x128xf32>
    %82 = math.tanh %81 : vector<8x128xf32>
    %c48_74 = arith.constant 48 : index
    %c0_75 = arith.constant 0 : index
    %83 = vector.load %arg11[%c48_74, %c0_75] : memref<64x128xf32, #tpu.memory_space<vmem>>, vector<8x128xf32>
    %cst_76 = arith.constant dense<0.000000e+00> : vector<8x128xf32>
    %84 = tpu.matmul %82, %51, %cst_76 {dimension_numbers = #tpu.dot_dimension_numbers<[1], [0], [0], [1], [0, 0, 1, 1], [], []>} : vector<8x128xf32>, vector<128x128xf32>, vector<8x128xf32> -> vector<8x128xf32>
    %85 = arith.addf %83, %84 : vector<8x128xf32>
    %86 = math.tanh %85 : vector<8x128xf32>
    %c56_77 = arith.constant 56 : index
    %c0_78 = arith.constant 0 : index
    %87 = vector.load %arg11[%c56_77, %c0_78] : memref<64x128xf32, #tpu.memory_space<vmem>>, vector<8x128xf32>
    %cst_79 = arith.constant dense<0.000000e+00> : vector<8x128xf32>
    %88 = tpu.matmul %86, %51, %cst_79 {dimension_numbers = #tpu.dot_dimension_numbers<[1], [0], [0], [1], [0, 0, 1, 1], [], []>} : vector<8x128xf32>, vector<128x128xf32>, vector<8x128xf32> -> vector<8x128xf32>
    %89 = arith.addf %87, %88 : vector<8x128xf32>
    %90 = math.tanh %89 : vector<8x128xf32>
    %c0_80 = arith.constant 0 : index
    %c0_81 = arith.constant 0 : index
    %91 = vector.load %arg8[%c0_80, %c0_81] : memref<128x128xf32, #tpu.memory_space<vmem>>, vector<128x128xf32>
    %cst_82 = arith.constant dense<0.000000e+00> : vector<8x128xf32>
    %92 = tpu.matmul %90, %91, %cst_82 {dimension_numbers = #tpu.dot_dimension_numbers<[1], [0], [0], [1], [0, 0, 1, 1], [], []>} : vector<8x128xf32>, vector<128x128xf32>, vector<8x128xf32> -> vector<8x128xf32>
    %c0_83 = arith.constant 0 : index
    %c0_84 = arith.constant 0 : index
    %93 = vector.load %arg9[%c0_83, %c0_84] : memref<1x128xf32, #tpu.memory_space<vmem>>, vector<1x128xf32>
    %94 = vector.broadcast %93 : vector<1x128xf32> to vector<8x128xf32>
    %95 = arith.addf %92, %94 : vector<8x128xf32>
    %c0_85 = arith.constant 0 : index
    %c0_86 = arith.constant 0 : index
    %96 = vector.load %arg10[%c0_85, %c0_86] : memref<8x128xf32, #tpu.memory_space<vmem>>, vector<8x128xf32>
    tpu.vector_store %arg10[%c0_85, %c0_86], %95 {strides = array<i32>} : memref<8x128xf32, #tpu.memory_space<vmem>>, vector<8x128xf32>,
    return
  }
  func.func @transform_0(%arg0: i32) -> (i32, i32, i32) {
    %c0_i32 = arith.constant 0 : i32
    %c0_i32_0 = arith.constant 0 : i32
    %c0_i32_1 = arith.constant 0 : i32
    return %c0_i32, %arg0, %c0_i32_0 : i32, i32, i32
  }
  func.func @transform_1(%arg0: i32) -> (i32, i32) {
    %c0_i32 = arith.constant 0 : i32
    %c0_i32_0 = arith.constant 0 : i32
    %c0_i32_1 = arith.constant 0 : i32
    return %c0_i32, %c0_i32_0 : i32, i32
  }
  func.func @transform_2(%arg0: i32) -> (i32, i32) {
    %c0_i32 = arith.constant 0 : i32
    %c0_i32_0 = arith.constant 0 : i32
    %c0_i32_1 = arith.constant 0 : i32
    return %c0_i32, %c0_i32_0 : i32, i32
  }
  func.func @transform_3(%arg0: i32) -> (i32, i32) {
    %c0_i32 = arith.constant 0 : i32
    %c0_i32_0 = arith.constant 0 : i32
    %c0_i32_1 = arith.constant 0 : i32
    return %c0_i32, %c0_i32_0 : i32, i32
  }
  func.func @transform_4(%arg0: i32) -> (i32, i32) {
    %c0_i32 = arith.constant 0 : i32
    %c0_i32_0 = arith.constant 0 : i32
    %c0_i32_1 = arith.constant 0 : i32
    return %c0_i32, %c0_i32_0 : i32, i32
  }
  func.func @transform_5(%arg0: i32) -> (i32, i32) {
    %c0_i32 = arith.constant 0 : i32
    %c0_i32_0 = arith.constant 0 : i32
    %c0_i32_1 = arith.constant 0 : i32
    return %c0_i32, %c0_i32_0 : i32, i32
  }
  func.func @transform_6(%arg0: i32) -> (i32, i32) {
    %c0_i32 = arith.constant 0 : i32
    %c0_i32_0 = arith.constant 0 : i32
    %c0_i32_1 = arith.constant 0 : i32
    return %c0_i32, %c0_i32_0 : i32, i32
  }
  func.func @transform_7(%arg0: i32) -> (i32, i32) {
    %c0_i32 = arith.constant 0 : i32
    %c0_i32_0 = arith.constant 0 : i32
    %c0_i32_1 = arith.constant 0 : i32
    return %c0_i32, %c0_i32_0 : i32, i32
  }
  func.func @transform_8(%arg0: i32) -> (i32, i32) {
    %c0_i32 = arith.constant 0 : i32
    %c0_i32_0 = arith.constant 0 : i32
    %c0_i32_1 = arith.constant 0 : i32
    return %c0_i32, %c0_i32_0 : i32, i32
  }
  func.func @transform_9(%arg0: i32) -> (i32, i32) {
    %c0_i32 = arith.constant 0 : i32
    %c0_i32_0 = arith.constant 0 : i32
    return %arg0, %c0_i32 : i32, i32
  }
}

</mosaic_0001>

<bundles_post_ra>
// kernel: rnn_forward.1
= control target key start
LH: loop header
LB: loop body
LE: loop exit
PB: predicated region body
PF: predicated region fallthrough
CT: control target
= control target key end

     0   :  { %14 = vsyncpa [#allocation4], 0  ;;  %s3936_s0 = inlined_call_operand.vmem [shape: f32[8,8,128], index: 0, kind: input, shape index: {}]   ;;  %s3937_s1 = inlined_call_operand.vmem [shape: f32[128,128], index: 1, kind: input, shape index: {}]   ;;  %s3938_s2 = inlined_call_operand.hbm [shape: f32[128,128], index: 2, kind: input, shape index: {}]   ;;  %s3939_s3 = inlined_call_operand.vmem [shape: f32[1,128], index: 3, kind: input, shape index: {}]   ;;  %s3940_s4 = inlined_call_operand.hbm [shape: f32[128,128], index: 4, kind: input, shape index: {}]   ;;  %s3941_s5 = inlined_call_operand.hbm [shape: f32[128,128], index: 5, kind: input, shape index: {}]   ;;  %s3942_s6 = inlined_call_operand.vmem [shape: f32[1,128], index: 6, kind: input, shape index: {}]   ;;  %s3943_s7 = inlined_call_operand.hbm [shape: f32[128,128], index: 7, kind: input, shape index: {}]   ;;  %s3944_s8 = inlined_call_operand.vmem [shape: f32[1,128], index: 8, kind: input, shape index: {}]   ;;  %s3945_s9 = inlined_call_operand.vmem [shape: f32[8,128], index: 9, kind: output, shape index: {}]  }
   0x1   :  { %15 = vsyncpa [#allocation6], 0 }
   0x2   :  { %16 = vsyncpa [#allocation9], 0  ;;  %s3314_s30 = smov [#allocation5]   ;;  %s3315_s11 = smov [#allocation3]  }
   0x3   :  { %s40_s10 = sshll.u32 %s3314_s30, 4  ;;  %s26_s12 = sshll.u32 %s3315_s11, 4  ;;  %s41_s10 = int_to_ptr.vmem [resolvable:$true] %s40_s10  ;;  %s3373_s12 = int_to_ptr.vmem [resolvable:$true] %s26_s12 }
   0x4   :  { %s3220_s15 = scalar_lea.hbm %s3940_s4, 2048 }
   0x5   :  { %p3221_p0 = scmp.ne.s32.totalorder %s3940_s4, %s3220_s15  ;;  %p3224_p1 = scmp.lt.u32.totalorder %s3220_s15, %s3940_s4 }
   0x7   :  { %p3226_p2 = pnand %p3224_p1, %p3221_p0 }
   0x9   :  { %3229 = shalt.err (!%p3226_p2)
}
   0xa   :  { %s3230_s20 = scalar_lea.vmem %s41_s10, 2048  ;;  %p3235_p4 = scmp.lt.s32.totalorder %s41_s10, %s41_s10 }
   0xb   :  { %p3231_p3 = scmp.ne.s32.totalorder %s41_s10, %s3230_s20  ;;  %p3236_p5 = scmp.lt.s32.totalorder %s3230_s20, %s3230_s20 }
   0xd   :  { %p3237_p6 = por %p3236_p5, %p3235_p4 }
   0xf   :  { %p3238_p7 = pnand %p3237_p6, %p3231_p3 }
  0x11   :  { %3241 = shalt.err (!%p3238_p7)
}
  0x12   :  { %s3316_s21 = smov 128   ;;  %s3317_s22 = smov 8  }
  0x13   :  { %46 = dma.hbm_to_vmem [thread:$0]  %s3940_s4, 2048, %s41_s10, [#allocation6], %s3316_s21, %s3316_s21, %s3317_s22  }
  0x14   :  { %s3242_s27 = scalar_lea.hbm %s3938_s2, 2048 }
  0x15   :  { %p3243_p8 = scmp.ne.s32.totalorder %s3938_s2, %s3242_s27  ;;  %p3246_p9 = scmp.lt.u32.totalorder %s3242_s27, %s3938_s2 }
  0x17   :  { %p3248_p10 = pnand %p3246_p9, %p3243_p8 }
  0x19   :  { %3251 = shalt.err (!%p3248_p10)
}
  0x1a   :  { %s3252_s13 = scalar_lea.vmem %s3373_s12, 2048  ;;  %p3257_p12 = scmp.lt.s32.totalorder %s3373_s12, %s3373_s12 }
  0x1b   :  { %p3253_p11 = scmp.ne.s32.totalorder %s3373_s12, %s3252_s13  ;;  %p3258_p13 = scmp.lt.s32.totalorder %s3252_s13, %s3252_s13 }
  0x1d   :  { %p3259_p0 = por %p3258_p13, %p3257_p12 }
  0x1f   :  { %p3260_p1 = pnand %p3259_p0, %p3253_p11 }
  0x21   :  { %3263 = shalt.err (!%p3260_p1)
}
  0x22   :  { %32 = dma.hbm_to_vmem [thread:$0]  %s3938_s2, 2048, %s3373_s12, [#allocation4], %s3316_s21, %s3316_s21, %s3317_s22  }
  0x23   :  { %s3318_s14 = smov [#allocation7]   ;;  %s3319_s16 = smov [#allocation8]  }
  0x24   :  { %s52_s15 = sshll.u32 %s3318_s14, 4  ;;  %s66_s17 = sshll.u32 %s3319_s16, 4  ;;  %s53_s15 = int_to_ptr.vmem [resolvable:$true] %s52_s15  ;;  %s3410_s17 = int_to_ptr.vmem [resolvable:$true] %s66_s17 }
  0x25   :  { %s3264_s20 = scalar_lea.hbm %s3941_s5, 2048 }
  0x26   :  { %p3265_p2 = scmp.ne.s32.totalorder %s3941_s5, %s3264_s20  ;;  %p3268_p3 = scmp.lt.u32.totalorder %s3264_s20, %s3941_s5 }
  0x28   :  { %p3270_p4 = pnand %p3268_p3, %p3265_p2 }
  0x2a   :  { %3273 = shalt.err (!%p3270_p4)
}
  0x2b   :  { %s3274_s2 = scalar_lea.vmem %s53_s15, 2048  ;;  %p3279_p6 = scmp.lt.s32.totalorder %s53_s15, %s53_s15 }
  0x2c   :  { %p3275_p5 = scmp.ne.s32.totalorder %s53_s15, %s3274_s2  ;;  %p3280_p7 = scmp.lt.s32.totalorder %s3274_s2, %s3274_s2 }
  0x2e   :  { %p3281_p8 = por %p3280_p7, %p3279_p6 }
  0x30   :  { %p3282_p9 = pnand %p3281_p8, %p3275_p5 }
  0x32   :  { %3285 = shalt.err (!%p3282_p9)
}
  0x33   :  { %58 = dma.hbm_to_vmem [thread:$0]  %s3941_s5, 2048, %s53_s15, [#allocation6], %s3316_s21, %s3316_s21, %s3317_s22  }
  0x34   :  { %s3286_s30 = scalar_lea.hbm %s3943_s7, 2048 }
  0x35   :  { %p3287_p10 = scmp.ne.s32.totalorder %s3943_s7, %s3286_s30  ;;  %p3290_p11 = scmp.lt.u32.totalorder %s3286_s30, %s3943_s7 }
  0x37   :  { %p3292_p12 = pnand %p3290_p11, %p3287_p10 }
  0x39   :  { %3295 = shalt.err (!%p3292_p12)
}
  0x3a   :  { %s3296_s14 = scalar_lea.vmem %s3410_s17, 2048  ;;  %p3301_p0 = scmp.lt.s32.totalorder %s3410_s17, %s3410_s17 }
  0x3b   :  { %p3297_p13 = scmp.ne.s32.totalorder %s3410_s17, %s3296_s14  ;;  %p3302_p1 = scmp.lt.s32.totalorder %s3296_s14, %s3296_s14 }
  0x3d   :  { %p3303_p2 = por %p3302_p1, %p3301_p0 }
  0x3f   :  { %p3304_p3 = pnand %p3303_p2, %p3297_p13 }
  0x41   :  { %3307 = shalt.err (!%p3304_p3)
}
  0x42   :  { %72 = dma.hbm_to_vmem [thread:$0]  %s3943_s7, 2048, %s3410_s17, [#allocation9], %s3316_s21, %s3316_s21, %s3317_s22  }
  0x43   :  { %3308 = dma.done.wait [#allocation4], 2048  }
  0x44   :  { %3309 = vsyncadd [#allocation4], 4294965248 }
  0x45   :  { %3310 = dma.done.wait [#allocation6], 4096  }
  0x46   :  { %3311 = vsyncadd [#allocation6], 4294963200 }
  0x47   :  { %3312 = dma.done.wait [#allocation9], 2048  }
  0x48   :  { %3313 = vsyncadd [#allocation9], 4294965248  ;;  %v3320_v0 = vmov 0.0|0.0   ;;  %vm3321_vm0 = vmmov 0   ;;  %v3322_v1 = vmov 0.0   ;;  %v87_v2 = vld [vmem:[%s3937_s1] sm:$0xff] }
  0x49   :  { %2739 = vmatprep.subr.bf16.mxu1 %v3320_v0  ;;  %2100 = vmatprep.mubr.msk.f32.mxu1 %vm3321_vm0, %v3322_v1  ;;  %v88_v3 = vld [vmem:[%s3937_s1 + $0x8] sm:$0xff]  ;;  %v103_v4 = vld [vmem:[#allocation3] sm:$0xff]  ;;  %v89_v7 = vld [vmem:[%s3937_s1 + $0x10] sm:$0xff] }
  0x4a   :  { %v2707_v5 = vpack.c.bf16 %v88_v3, %v87_v2  ;;  %v104_v6 = vld [vmem:[#allocation3 + $0x8] sm:$0xff]  ;;  %v90_v8 = vld [vmem:[%s3937_s1 + $0x18] sm:$0xff]  ;;  %v105_v11 = vld [vmem:[#allocation3 + $0x10] sm:$0xff] }
  0x4b   :  { %v3462_v9 = vpack.c.bf16 %v104_v6, %v103_v4  ;;  %v2711_v10 = vpack.c.bf16 %v90_v8, %v89_v7  ;;  %v106_v12 = vld [vmem:[#allocation3 + $0x18] sm:$0xff]  ;;  %v91_v13 = vld [vmem:[%s3937_s1 + $0x20] sm:$0xff]  ;;  %v92_v14 = vld [vmem:[%s3937_s1 + $0x28] sm:$0xff] }
  0x4c   :  { %2708 = vmatprep.subr.bf16.mxu0 %v2707_v5  ;;  %v3471_v15 = vpack.c.bf16 %v106_v12, %v105_v11  ;;  %v2715_v16 = vpack.c.bf16 %v92_v14, %v91_v13  ;;  %v107_v17 = vld [vmem:[#allocation3 + $0x20] sm:$0xff]  ;;  %v108_v18 = vld [vmem:[#allocation3 + $0x28] sm:$0xff]  ;;  %v93_v19 = vld [vmem:[%s3937_s1 + $0x30] sm:$0xff] }
  0x4d   :  { %2710 = vmatpush3.bf16.msra.mxu0 %v2707_v5  ;;  %2741 = vmatpush3.bf16.msra.mxu1 %v3462_v9  ;;  %v94_v20 = vld [vmem:[%s3937_s1 + $0x38] sm:$0xff]  ;;  %v3481_v21 = vpack.c.bf16 %v108_v18, %v107_v17  ;;  %v109_v23 = vld [vmem:[#allocation3 + $0x30] sm:$0xff]  ;;  %v95_v25 = vld [vmem:[%s3937_s1 + $0x40] sm:$0xff] }
  0x4e   :  { %2712 = vmatprep.subr.bf16.mxu0 %v2711_v10  ;;  %2742 = vmatprep.subr.bf16.mxu1 %v3320_v0  ;;  %v2719_v22 = vpack.c.bf16 %v94_v20, %v93_v19  ;;  %v110_v24 = vld [vmem:[#allocation3 + $0x38] sm:$0xff]  ;;  %v96_v26 = vld [vmem:[%s3937_s1 + $0x48] sm:$0xff]  ;;  %v120_v27 = vld [vmem:[%s3936_s0] sm:$0xff] }
  0x4f   :  { %2056 = vmatprep.mubr.f32.mxu0 %v120_v27  ;;  %v3494_v28 = vpack.c.bf16 %v110_v24, %v109_v23  ;;  %v2723_v29 = vpack.c.bf16 %v96_v26, %v95_v25  ;;  %v111_v30 = vld [vmem:[#allocation3 + $0x40] sm:$0xff]  ;;  %v112_v31 = vld [vmem:[#allocation3 + $0x48] sm:$0xff]  ;;  %v97_v32 = vld [vmem:[%s3937_s1 + $0x50] sm:$0xff] }
  0x50   :  { %v98_v33 = vld [vmem:[%s3937_s1 + $0x58] sm:$0xff]  ;;  %v3504_v34 = vpack.c.bf16 %v112_v31, %v111_v30  ;;  %v113_v36 = vld [vmem:[#allocation3 + $0x50] sm:$0xff]  ;;  %v99_v38 = vld [vmem:[%s3937_s1 + $0x60] sm:$0xff] }
  0x51   :  { %2714 = vmatpush3.bf16.msra.mxu0 %v2711_v10  ;;  %2744 = vmatpush3.bf16.msra.mxu1 %v3471_v15  ;;  %v2727_v35 = vpack.c.bf16 %v98_v33, %v97_v32  ;;  %v114_v37 = vld [vmem:[#allocation3 + $0x58] sm:$0xff]  ;;  %v100_v39 = vld [vmem:[%s3937_s1 + $0x68] sm:$0xff]  ;;  %v115_v42 = vld [vmem:[#allocation3 + $0x60] sm:$0xff] }
  0x52   :  { %2716 = vmatprep.subr.bf16.mxu0 %v2715_v16  ;;  %2745 = vmatprep.subr.bf16.mxu1 %v3320_v0  ;;  %v3514_v40 = vpack.c.bf16 %v114_v37, %v113_v36  ;;  %v2731_v41 = vpack.c.bf16 %v100_v39, %v99_v38  ;;  %v116_v43 = vld [vmem:[#allocation3 + $0x68] sm:$0xff]  ;;  %v101_v44 = vld [vmem:[%s3937_s1 + $0x70] sm:$0xff]  ;;  %v102_v45 = vld [vmem:[%s3937_s1 + $0x78] sm:$0xff] }
  0x53   :  { %v3524_v46 = vpack.c.bf16 %v116_v43, %v115_v42  ;;  %v2735_v47 = vpack.c.bf16 %v102_v45, %v101_v44  ;;  %v117_v48 = vld [vmem:[#allocation3 + $0x70] sm:$0xff]  ;;  %v118_v49 = vld [vmem:[#allocation3 + $0x78] sm:$0xff]  ;;  %v121_v51 = vld [vmem:[%s3936_s0 + $0x8] sm:$0xff] }
  0x54   :  { %v3528_v50 = vpack.c.bf16 %v118_v49, %v117_v48  ;;  %v122_v52 = vld [vmem:[%s3936_s0 + $0x10] sm:$0xff]  ;;  %v123_v53 = vld [vmem:[%s3936_s0 + $0x18] sm:$0xff]  ;;  %v124_v54 = vld [vmem:[%s3936_s0 + $0x20] sm:$0xff] }
  0x55   :  { %2718 = vmatpush3.bf16.msra.mxu0 %v2715_v16  ;;  %2747 = vmatpush3.bf16.msra.mxu1 %v3481_v21  ;;  %v125_v55 = vld [vmem:[%s3936_s0 + $0x28] sm:$0xff]  ;;  %v126_v56 = vld [vmem:[%s3936_s0 + $0x30] sm:$0xff]  ;;  %v127_v57 = vld [vmem:[%s3936_s0 + $0x38] sm:$0xff] }
  0x56   :  { %2720 = vmatprep.subr.bf16.mxu0 %v2719_v22  ;;  %2748 = vmatprep.subr.bf16.mxu1 %v3320_v0  ;;  %v3595_v58 = vld [vmem:[%s3939_s3] ss:$0 sm:$0xff]  ;;  %v841_v37 = vld [vmem:[#allocation5 + $0x10] sm:$0xff]  ;;  %v842_v38 = vld [vmem:[#allocation5 + $0x18] sm:$0xff] }
  0x57   :  { %v2935_v39 = vpack.c.bf16 %v842_v38, %v841_v37  ;;  %v844_v42 = vld [vmem:[#allocation5 + $0x28] sm:$0xff]  ;;  %v845_v44 = vld [vmem:[#allocation5 + $0x30] sm:$0xff]  ;;  %v846_v45 = vld [vmem:[#allocation5 + $0x38] sm:$0xff] }
  0x58   :  { %v848_v48 = vld [vmem:[#allocation5 + $0x48] sm:$0xff] }
  0x59   :  { %2722 = vmatpush3.bf16.msra.mxu0 %v2719_v22  ;;  %2750 = vmatpush3.bf16.msra.mxu1 %v3494_v28 }
  0x5a   :  { %2724 = vmatprep.subr.bf16.mxu0 %v2723_v29  ;;  %2751 = vmatprep.subr.bf16.mxu1 %v3320_v0 }
  0x5d   :  { %2726 = vmatpush3.bf16.msra.mxu0 %v2723_v29  ;;  %2753 = vmatpush3.bf16.msra.mxu1 %v3504_v34 }
  0x5e   :  { %2728 = vmatprep.subr.bf16.mxu0 %v2727_v35  ;;  %2754 = vmatprep.subr.bf16.mxu1 %v3320_v0 }
  0x61   :  { %2730 = vmatpush3.bf16.msra.mxu0 %v2727_v35  ;;  %2756 = vmatpush3.bf16.msra.mxu1 %v3514_v40 }
  0x62   :  { %2732 = vmatprep.subr.bf16.mxu0 %v2731_v41  ;;  %2757 = vmatprep.subr.bf16.mxu1 %v3320_v0 }
  0x65   :  { %2734 = vmatpush3.bf16.msra.mxu0 %v2731_v41  ;;  %2759 = vmatpush3.bf16.msra.mxu1 %v3524_v46  ;;  %v843_v41 = vld [vmem:[#allocation5 + $0x20] sm:$0xff] }
  0x66   :  { %2736 = vmatprep.subr.bf16.mxu0 %v2735_v47  ;;  %2760 = vmatprep.subr.bf16.mxu1 %v3320_v0  ;;  %v2939_v43 = vpack.c.bf16 %v844_v42, %v843_v41 }
  0x69   :  { %2738 = vmatpush3.bf16.msra.mxu0 %v2735_v47  ;;  %2762 = vmatpush3.bf16.msra.mxu1 %v3528_v50  ;;  %v847_v47 = vld [vmem:[#allocation5 + $0x40] sm:$0xff] }
  0x6a   :  { %2763 = vmatprep.subr.bf16.mxu0 %v3320_v0  ;;  %2787 = vmatprep.subr.bf16.mxu1 %v3320_v0  ;;  %v2947_v49 = vpack.c.bf16 %v848_v48, %v847_v47 }
  0x6c   :  { %2057 = vmatmul.mubr.f32.vlgmr.msra.gmra.mrb[0].mxu0 %v121_v51  ;;  %2101 = vmatmul.mubr.f32.vlgmr.msra.gmra.mrb[0].mxu1 %v3322_v1  ;;  %v850_v51 = vld [vmem:[#allocation5 + $0x58] sm:$0xff] }
  0x6d   :  { %2765 = vmatpush3.bf16.msra.mxu0 %v3462_v9  ;;  %2789 = vmatpush3.bf16.msra.mxu1 %v3462_v9 }
  0x6e   :  { %2766 = vmatprep.subr.bf16.mxu0 %v3320_v0  ;;  %2790 = vmatprep.subr.bf16.mxu1 %v3320_v0 }
  0x6f   :  { %2170 = vmatprep.mubr.msk.f32.mxu1 %vm3321_vm0, %v3322_v1  ;;  %2059 = vmatprep.mubr.f32.mxu0 %v122_v52 }
  0x70   :  { %2060 = vmatmul.mubr.f32.gmra.mrb[2].mxu0 %v123_v53  ;;  %v851_v53 = vld [vmem:[#allocation5 + $0x60] sm:$0xff] }
  0x71   :  { %2768 = vmatpush3.bf16.msra.mxu0 %v3471_v15  ;;  %2792 = vmatpush3.bf16.msra.mxu1 %v3471_v15 }
  0x72   :  { %2769 = vmatprep.subr.bf16.mxu0 %v3320_v0  ;;  %2793 = vmatprep.subr.bf16.mxu1 %v3320_v0 }
  0x73   :  { %2062 = vmatprep.mubr.f32.mxu0 %v124_v54  ;;  %v852_v54 = vld [vmem:[#allocation5 + $0x68] sm:$0xff] }
  0x74   :  { %2063 = vmatmul.mubr.f32.gmra.mrb[4].mxu0 %v125_v55  ;;  %v2955_v55 = vpack.c.bf16 %v852_v54, %v851_v53 }
  0x75   :  { %2771 = vmatpush3.bf16.msra.mxu0 %v3481_v21  ;;  %2795 = vmatpush3.bf16.msra.mxu1 %v3481_v21 }
  0x76   :  { %2772 = vmatprep.subr.bf16.mxu0 %v3320_v0  ;;  %2796 = vmatprep.subr.bf16.mxu1 %v3320_v0 }
  0x77   :  { %2065 = vmatprep.mubr.f32.mxu0 %v126_v56  ;;  %v853_v56 = vld [vmem:[#allocation5 + $0x70] sm:$0xff] }
  0x78   :  { %2066 = vmatmul.mubr.f32.gmra.mrb[6].mxu0 %v127_v57  ;;  %v854_v57 = vld [vmem:[#allocation5 + $0x78] sm:$0xff] }
  0x79   :  { %2774 = vmatpush3.bf16.msra.mxu0 %v3494_v28  ;;  %2798 = vmatpush3.bf16.msra.mxu1 %v3494_v28 }
  0x7a   :  { %2775 = vmatprep.subr.bf16.mxu0 %v3320_v0  ;;  %2799 = vmatprep.subr.bf16.mxu1 %v3320_v0 }
  0x7b   :  { %2135 = vmatprep.mubr.msk.f32.mxu0 %vm3321_vm0, %v3322_v1 }
  0x7d   :  { %2777 = vmatpush3.bf16.msra.mxu0 %v3504_v34  ;;  %2801 = vmatpush3.bf16.msra.mxu1 %v3504_v34 }
  0x7e   :  { %2778 = vmatprep.subr.bf16.mxu0 %v3320_v0  ;;  %2802 = vmatprep.subr.bf16.mxu1 %v3320_v0 }
  0x81   :  { %2780 = vmatpush3.bf16.msra.mxu0 %v3514_v40  ;;  %2804 = vmatpush3.bf16.msra.mxu1 %v3514_v40 }
  0x82   :  { %2781 = vmatprep.subr.bf16.mxu0 %v3320_v0  ;;  %2805 = vmatprep.subr.bf16.mxu1 %v3320_v0 }
  0x85   :  { %2783 = vmatpush3.bf16.msra.mxu0 %v3524_v46  ;;  %2807 = vmatpush3.bf16.msra.mxu1 %v3524_v46 }
  0x86   :  { %2784 = vmatprep.subr.bf16.mxu0 %v3320_v0  ;;  %2808 = vmatprep.subr.bf16.mxu1 %v3320_v0 }
  0x89   :  { %2786 = vmatpush3.bf16.msra.mxu0 %v3528_v50  ;;  %2810 = vmatpush3.bf16.msra.mxu1 %v3528_v50 }
  0x8a   :  { %2811 = vmatprep.subr.bf16.mxu0 %v3320_v0  ;;  %2835 = vmatprep.subr.bf16.mxu1 %v3320_v0 }
 0x13f   :  { %v2058_v59 = vpop.f32.mrb[0].mxu0  ;;  %v314_v60 = vpop.f32.mrb[0].mxu1 }
 0x140   :  { %v200_v61 = vpop.f32.mrb[1].mxu0  ;;  %v2102_v62 = vpop.f32.mrb[1].mxu1  ;;  %v206_v11 = vadd.f32 %v2058_v59, %v3595_v58  ;;  %v2959_v59 = vpack.c.bf16 %v854_v57, %v853_v56 }
 0x141   :  { %v201_v63 = vadd.f32 %v3595_v58, %v200_v61  ;;  %v856_v61 = vld [vmem:[#allocation7 + $0x8] sm:$0xff] }
 0x143   :  { %v318_v2 = vadd.f32 %v314_v60, %v201_v63  ;;  %v2061_v4 = vpop.f32.mrb[2].mxu0  ;;  %v855_v60 = vld [vmem:[#allocation7] sm:$0xff]  ;;  %v857_v63 = vld [vmem:[#allocation7 + $0x10] sm:$0xff] }
 0x144   :  { %v210_v5 = vpop.f32.mrb[3].mxu0  ;;  %v216_v23 = vadd.f32 %v2061_v4, %v3595_v58  ;;  %v3723_v62 = vpack.c.bf16 %v856_v61, %v855_v60  ;;  %v859_v4 = vld [vmem:[#allocation7 + $0x20] sm:$0xff] }
 0x145   :  { %3188 = vtanh.f32 %v318_v2  ;;  %v211_v17 = vadd.f32 %v3595_v58, %v210_v5  ;;  %v858_v2 = vld [vmem:[#allocation7 + $0x18] sm:$0xff]  ;;  %v860_v5 = vld [vmem:[#allocation7 + $0x28] sm:$0xff] }
 0x147   :  { %v3619_v6 = vpop.f32.mrb[4].mxu0 }
 0x148   :  { %v3621_v7 = vpop.f32.mrb[5].mxu0 }
 0x149   :  { %v221_v29 = vadd.f32 %v3595_v58, %v3621_v7  ;;  %v861_v7 = vld [vmem:[#allocation7 + $0x30] sm:$0xff] }
 0x14b   :  { %v3623_v8 = vpop.f32.mrb[6].mxu0 }
 0x14c   :  { %v3625_v10 = vpop.f32.mrb[7].mxu0 }
 0x14f   :  { %v3598_v3 = vpop.eup %3188 }
 0x150   :  { %2136 = vmatmul.mubr.f32.vlgmr.msra.gmra.mrb[8].mxu0 %v3598_v3 }
 0x151   :  { %2813 = vmatpush3.bf16.msra.mxu0 %v3462_v9  ;;  %2205 = vmatprep.mubr.msk.f32.mxu0 %vm3321_vm0, %v3322_v1 }
 0x152   :  { %2814 = vmatprep.subr.bf16.mxu0 %v3320_v0 }
 0x155   :  { %2816 = vmatpush3.bf16.msra.mxu0 %v3471_v15 }
 0x156   :  { %2817 = vmatprep.subr.bf16.mxu0 %v3320_v0 }
 0x159   :  { %2819 = vmatpush3.bf16.msra.mxu0 %v3481_v21 }
 0x15a   :  { %2820 = vmatprep.subr.bf16.mxu0 %v3320_v0 }
 0x15d   :  { %2822 = vmatpush3.bf16.msra.mxu0 %v3494_v28 }
 0x15e   :  { %2823 = vmatprep.subr.bf16.mxu0 %v3320_v0 }
 0x161   :  { %2825 = vmatpush3.bf16.msra.mxu0 %v3504_v34 }
 0x162   :  { %2826 = vmatprep.subr.bf16.mxu0 %v3320_v0 }
 0x165   :  { %2828 = vmatpush3.bf16.msra.mxu0 %v3514_v40 }
 0x166   :  { %2829 = vmatprep.subr.bf16.mxu0 %v3320_v0 }
 0x169   :  { %2831 = vmatpush3.bf16.msra.mxu0 %v3524_v46 }
 0x16a   :  { %2832 = vmatprep.subr.bf16.mxu0 %v3320_v0 }
 0x16d   :  { %2834 = vmatpush3.bf16.msra.mxu0 %v3528_v50 }
 0x16e   :  { %2859 = vmatprep.subr.bf16.mxu0 %v3320_v0 }
 0x223   :  { %v388_v12 = vpop.f32.mrb[8].mxu0 }
 0x224   :  { %v392_v13 = vadd.f32 %v388_v12, %v206_v11  ;;  %v2137_v14 = vpop.f32.mrb[9].mxu0  ;;  %v862_v11 = vld [vmem:[#allocation7 + $0x38] sm:$0xff] }
 0x225   :  { %v3735_v12 = vpack.c.bf16 %v862_v11, %v861_v7  ;;  %v864_v14 = vld [vmem:[#allocation7 + $0x48] sm:$0xff] }
 0x226   :  { %3190 = vtanh.f32 %v392_v13  ;;  %v863_v13 = vld [vmem:[#allocation7 + $0x40] sm:$0xff] }
 0x230   :  { %v3628_v16 = vpop.eup %3190 }
 0x231   :  { %2171 = vmatmul.mubr.f32.vlgmr.msra.gmra.mrb[2].mxu1 %v3628_v16 }
 0x232   :  { %2837 = vmatpush3.bf16.msra.mxu1 %v3462_v9  ;;  %2240 = vmatprep.mubr.msk.f32.mxu1 %vm3321_vm0, %v3322_v1 }
 0x233   :  { %2838 = vmatprep.subr.bf16.mxu1 %v3320_v0 }
 0x236   :  { %2840 = vmatpush3.bf16.msra.mxu1 %v3471_v15 }
 0x237   :  { %2841 = vmatprep.subr.bf16.mxu1 %v3320_v0 }
 0x23a   :  { %2843 = vmatpush3.bf16.msra.mxu1 %v3481_v21 }
 0x23b   :  { %2844 = vmatprep.subr.bf16.mxu1 %v3320_v0 }
 0x23e   :  { %2846 = vmatpush3.bf16.msra.mxu1 %v3494_v28 }
 0x23f   :  { %2847 = vmatprep.subr.bf16.mxu1 %v3320_v0 }
 0x242   :  { %2849 = vmatpush3.bf16.msra.mxu1 %v3504_v34 }
 0x243   :  { %2850 = vmatprep.subr.bf16.mxu1 %v3320_v0 }
 0x246   :  { %2852 = vmatpush3.bf16.msra.mxu1 %v3514_v40 }
 0x247   :  { %2853 = vmatprep.subr.bf16.mxu1 %v3320_v0 }
 0x24a   :  { %2855 = vmatpush3.bf16.msra.mxu1 %v3524_v46 }
 0x24b   :  { %2856 = vmatprep.subr.bf16.mxu1 %v3320_v0 }
 0x24e   :  { %2858 = vmatpush3.bf16.msra.mxu1 %v3528_v50 }
 0x24f   :  { %2883 = vmatprep.subr.bf16.mxu1 %v3320_v0 }
 0x304   :  { %v462_v18 = vpop.f32.mrb[2].mxu1 }
 0x305   :  { %v466_v19 = vadd.f32 %v462_v18, %v211_v17  ;;  %v2172_v20 = vpop.f32.mrb[3].mxu1  ;;  %v865_v17 = vld [vmem:[#allocation7 + $0x50] sm:$0xff]  ;;  %v866_v18 = vld [vmem:[#allocation7 + $0x58] sm:$0xff] }
 0x306   :  { %v867_v20 = vld [vmem:[#allocation7 + $0x60] sm:$0xff] }
 0x307   :  { %3192 = vtanh.f32 %v466_v19  ;;  %v3743_v19 = vpack.c.bf16 %v866_v18, %v865_v17  ;;  %v1586_v17 = vld [vmem:[#allocation8 + $0x18] sm:$0xff] }
 0x311   :  { %v3650_v22 = vpop.eup %3192 }
 0x312   :  { %2206 = vmatmul.mubr.f32.vlgmr.msra.gmra.mrb[10].mxu0 %v3650_v22 }
 0x313   :  { %2861 = vmatpush3.bf16.msra.mxu0 %v3462_v9  ;;  %2275 = vmatprep.mubr.msk.f32.mxu0 %vm3321_vm0, %v3322_v1 }
 0x314   :  { %2862 = vmatprep.subr.bf16.mxu0 %v3320_v0 }
 0x317   :  { %2864 = vmatpush3.bf16.msra.mxu0 %v3471_v15 }
 0x318   :  { %2865 = vmatprep.subr.bf16.mxu0 %v3320_v0 }
 0x31b   :  { %2867 = vmatpush3.bf16.msra.mxu0 %v3481_v21 }
 0x31c   :  { %2868 = vmatprep.subr.bf16.mxu0 %v3320_v0 }
 0x31f   :  { %2870 = vmatpush3.bf16.msra.mxu0 %v3494_v28 }
 0x320   :  { %2871 = vmatprep.subr.bf16.mxu0 %v3320_v0 }
 0x323   :  { %2873 = vmatpush3.bf16.msra.mxu0 %v3504_v34 }
 0x324   :  { %2874 = vmatprep.subr.bf16.mxu0 %v3320_v0 }
 0x327   :  { %2876 = vmatpush3.bf16.msra.mxu0 %v3514_v40 }
 0x328   :  { %2877 = vmatprep.subr.bf16.mxu0 %v3320_v0 }
 0x32b   :  { %2879 = vmatpush3.bf16.msra.mxu0 %v3524_v46 }
 0x32c   :  { %2880 = vmatprep.subr.bf16.mxu0 %v3320_v0 }
 0x32f   :  { %2882 = vmatpush3.bf16.msra.mxu0 %v3528_v50 }
 0x330   :  { %2907 = vmatprep.subr.bf16.mxu0 %v3320_v0 }
 0x3e5   :  { %v536_v24 = vpop.f32.mrb[10].mxu0 }
 0x3e6   :  { %v540_v25 = vadd.f32 %v536_v24, %v216_v23  ;;  %v2207_v26 = vpop.f32.mrb[11].mxu0  ;;  %v869_v24 = vld [vmem:[#allocation7 + $0x70] sm:$0xff] }
 0x3e8   :  { %3194 = vtanh.f32 %v540_v25  ;;  %v870_v25 = vld [vmem:[#allocation7 + $0x78] sm:$0xff] }
 0x3e9   :  { %v3751_v26 = vpack.c.bf16 %v870_v25, %v869_v24  ;;  %v1590_v24 = vld [vmem:[#allocation8 + $0x38] sm:$0xff] }
 0x3f2   :  { %v3672_v27 = vpop.eup %3194 }
 0x3f3   :  { %2241 = vmatmul.mubr.f32.vlgmr.msra.gmra.mrb[4].mxu1 %v3672_v27 }
 0x3f4   :  { %2885 = vmatpush3.bf16.msra.mxu1 %v3462_v9  ;;  %2310 = vmatprep.mubr.msk.f32.mxu1 %vm3321_vm0, %v3322_v1 }
 0x3f5   :  { %2886 = vmatprep.subr.bf16.mxu1 %v3320_v0 }
 0x3f8   :  { %2888 = vmatpush3.bf16.msra.mxu1 %v3471_v15 }
 0x3f9   :  { %2889 = vmatprep.subr.bf16.mxu1 %v3320_v0 }
 0x3fc   :  { %2891 = vmatpush3.bf16.msra.mxu1 %v3481_v21 }
 0x3fd   :  { %2892 = vmatprep.subr.bf16.mxu1 %v3320_v0 }
 0x400   :  { %2894 = vmatpush3.bf16.msra.mxu1 %v3494_v28 }
 0x401   :  { %2895 = vmatprep.subr.bf16.mxu1 %v3320_v0 }
 0x404   :  { %2897 = vmatpush3.bf16.msra.mxu1 %v3504_v34 }
 0x405   :  { %2898 = vmatprep.subr.bf16.mxu1 %v3320_v0 }
 0x408   :  { %2900 = vmatpush3.bf16.msra.mxu1 %v3514_v40 }
 0x409   :  { %2901 = vmatprep.subr.bf16.mxu1 %v3320_v0 }
 0x40c   :  { %2903 = vmatpush3.bf16.msra.mxu1 %v3524_v46 }
 0x40d   :  { %2904 = vmatprep.subr.bf16.mxu1 %v3320_v0 }
 0x410   :  { %2906 = vmatpush3.bf16.msra.mxu1 %v3528_v50 }
 0x4c6   :  { %v610_v30 = vpop.f32.mrb[4].mxu1 }
 0x4c7   :  { %v614_v31 = vadd.f32 %v610_v30, %v221_v29  ;;  %v2242_v32 = vpop.f32.mrb[5].mxu1 }
 0x4c9   :  { %3196 = vtanh.f32 %v614_v31 }
 0x4d3   :  { %v3694_v33 = vpop.eup %3196 }
 0x4d4   :  { %2276 = vmatmul.mubr.f32.vlgmr.msra.gmra.mrb[12].mxu0 %v3694_v33 }
 0x4d5   :  { %2909 = vmatpush3.bf16.msra.mxu0 %v3462_v9  ;;  %2345 = vmatprep.mubr.msk.f32.mxu0 %vm3321_vm0, %v3322_v1  ;;  %v839_v9 = vld [vmem:[#allocation5] sm:$0xff] }
 0x4d6   :  { %2910 = vmatprep.subr.bf16.mxu0 %v3320_v0 }
 0x4d9   :  { %2912 = vmatpush3.bf16.msra.mxu0 %v3471_v15  ;;  %v840_v15 = vld [vmem:[#allocation5 + $0x8] sm:$0xff] }
 0x4da   :  { %2913 = vmatprep.subr.bf16.mxu0 %v3320_v0 }
 0x4dd   :  { %2915 = vmatpush3.bf16.msra.mxu0 %v3481_v21  ;;  %v2931_v21 = vpack.c.bf16 %v840_v15, %v839_v9 }
 0x4de   :  { %2916 = vmatprep.subr.bf16.mxu0 %v3320_v0 }
 0x4df   :  { %2932 = vmatprep.subr.bf16.mxu1 %v2931_v21 }
 0x4e1   :  { %2918 = vmatpush3.bf16.msra.mxu0 %v3494_v28  ;;  %v226_v28 = vadd.f32 %v3619_v6, %v3595_v58  ;;  %v3731_v6 = vpack.c.bf16 %v860_v5, %v859_v4 }
 0x4e2   :  { %2919 = vmatprep.subr.bf16.mxu0 %v3320_v0 }
 0x4e5   :  { %2921 = vmatpush3.bf16.msra.mxu0 %v3504_v34 }
 0x4e6   :  { %2922 = vmatprep.subr.bf16.mxu0 %v3320_v0 }
 0x4e9   :  { %2924 = vmatpush3.bf16.msra.mxu0 %v3514_v40 }
 0x4ea   :  { %2925 = vmatprep.subr.bf16.mxu0 %v3320_v0 }
 0x4ed   :  { %2927 = vmatpush3.bf16.msra.mxu0 %v3524_v46  ;;  %v2943_v46 = vpack.c.bf16 %v846_v45, %v845_v44 }
 0x4ee   :  { %2928 = vmatprep.subr.bf16.mxu0 %v3320_v0 }
 0x4f1   :  { %2930 = vmatpush3.bf16.msra.mxu0 %v3528_v50  ;;  %v849_v50 = vld [vmem:[#allocation5 + $0x50] sm:$0xff] }
 0x4f2   :  { %2963 = vmatprep.subr.bf16.mxu0 %v3320_v0  ;;  %v2951_v52 = vpack.c.bf16 %v850_v51, %v849_v50 }
 0x5a7   :  { %v684_v34 = vpop.f32.mrb[12].mxu0 }
 0x5a8   :  { %v688_v35 = vadd.f32 %v684_v34, %v226_v28  ;;  %v2277_v36 = vpop.f32.mrb[13].mxu0  ;;  %v236_v34 = vadd.f32 %v3623_v8, %v3595_v58 }
 0x5aa   :  { %3198 = vtanh.f32 %v688_v35 }
 0x5b4   :  { %v3199_v40 = vpop.eup %3198 }
 0x5b5   :  { %2311 = vmatmul.mubr.f32.vlgmr.msra.gmra.mrb[6].mxu1 %v3199_v40 }
 0x5b6   :  { %2934 = vmatpush3.bf16.msra.mxu1 %v2931_v21  ;;  %2380 = vmatprep.mubr.f32.mxu1 %v3598_v3  ;;  %v3727_v3 = vpack.c.bf16 %v858_v2, %v857_v63 }
 0x5b7   :  { %2936 = vmatprep.subr.bf16.mxu1 %v2935_v39 }
 0x5ba   :  { %2938 = vmatpush3.bf16.msra.mxu1 %v2935_v39  ;;  %v3811_v39 = vld [vmem:[%s3942_s6] ss:$0 sm:$0xff] }
 0x5bb   :  { %2940 = vmatprep.subr.bf16.mxu1 %v2939_v43 }
 0x5be   :  { %2942 = vmatpush3.bf16.msra.mxu1 %v2939_v43 }
 0x5bf   :  { %2944 = vmatprep.subr.bf16.mxu1 %v2943_v46 }
 0x5c2   :  { %2946 = vmatpush3.bf16.msra.mxu1 %v2943_v46 }
 0x5c3   :  { %2948 = vmatprep.subr.bf16.mxu1 %v2947_v49 }
 0x5c6   :  { %2950 = vmatpush3.bf16.msra.mxu1 %v2947_v49 }
 0x5c7   :  { %2952 = vmatprep.subr.bf16.mxu1 %v2951_v52 }
 0x5ca   :  { %2954 = vmatpush3.bf16.msra.mxu1 %v2951_v52 }
 0x5cb   :  { %2956 = vmatprep.subr.bf16.mxu1 %v2955_v55 }
 0x5ce   :  { %2958 = vmatpush3.bf16.msra.mxu1 %v2955_v55 }
 0x5cf   :  { %2960 = vmatprep.subr.bf16.mxu1 %v2959_v59 }
 0x5d2   :  { %2962 = vmatpush3.bf16.msra.mxu1 %v2959_v59 }
 0x5d3   :  { %2987 = vmatprep.subr.bf16.mxu1 %v3320_v0 }
 0x5d5   :  { %2381 = vmatmul.mubr.f32.vlgmr.msra.gmra.mrb[8].mxu1 %v3628_v16  ;;  %v3739_v16 = vpack.c.bf16 %v864_v14, %v863_v13  ;;  %v1584_v13 = vld [vmem:[#allocation8 + $0x8] sm:$0xff]  ;;  %v1585_v14 = vld [vmem:[#allocation8 + $0x10] sm:$0xff] }
 0x5d6   :  { %2383 = vmatprep.mubr.f32.mxu1 %v3650_v22  ;;  %2989 = vmatpush3.bf16.msra.mxu1 %v3723_v62  ;;  %v868_v22 = vld [vmem:[#allocation7 + $0x68] sm:$0xff]  ;;  %v3159_v18 = vpack.c.bf16 %v1586_v17, %v1585_v14 }
 0x5d7   :  { %2990 = vmatprep.subr.bf16.mxu1 %v3320_v0  ;;  %v3747_v23 = vpack.c.bf16 %v868_v22, %v867_v20  ;;  %v1588_v20 = vld [vmem:[#allocation8 + $0x28] sm:$0xff] }
 0x5d9   :  { %2384 = vmatmul.mubr.f32.gmra.mrb[10].mxu1 %v3672_v27  ;;  %v231_v27 = vadd.f32 %v3595_v58, %v3625_v10 }
 0x5da   :  { %2386 = vmatprep.mubr.f32.mxu1 %v3694_v33  ;;  %2992 = vmatpush3.bf16.msra.mxu1 %v3727_v3 }
 0x5db   :  { %2993 = vmatprep.subr.bf16.mxu1 %v3320_v0 }
 0x5dd   :  { %2387 = vmatmul.mubr.f32.gmra.mrb[12].mxu1 %v3199_v40 }
 0x5de   :  { %2995 = vmatpush3.bf16.msra.mxu1 %v3731_v6 }
 0x5df   :  { %2996 = vmatprep.subr.bf16.mxu1 %v3320_v0 }
 0x5e2   :  { %2998 = vmatpush3.bf16.msra.mxu1 %v3735_v12 }
 0x5e3   :  { %2999 = vmatprep.subr.bf16.mxu1 %v3320_v0 }
 0x5e6   :  { %3001 = vmatpush3.bf16.msra.mxu1 %v3739_v16 }
 0x5e7   :  { %3002 = vmatprep.subr.bf16.mxu1 %v3320_v0 }
 0x5ea   :  { %3004 = vmatpush3.bf16.msra.mxu1 %v3743_v19 }
 0x5eb   :  { %3005 = vmatprep.subr.bf16.mxu1 %v3320_v0 }
 0x5ee   :  { %3007 = vmatpush3.bf16.msra.mxu1 %v3747_v23 }
 0x5ef   :  { %3008 = vmatprep.subr.bf16.mxu1 %v3320_v0 }
 0x5f2   :  { %3010 = vmatpush3.bf16.msra.mxu1 %v3751_v26 }
 0x5f3   :  { %3035 = vmatprep.subr.bf16.mxu1 %v3320_v0 }
 0x688   :  { %v758_v29 = vpop.f32.mrb[6].mxu1 }
 0x689   :  { %v762_v30 = vadd.f32 %v758_v29, %v231_v27  ;;  %v2312_v31 = vpop.f32.mrb[7].mxu1 }
 0x68b   :  { %3200 = vtanh.f32 %v762_v30 }
 0x695   :  { %v3201_v32 = vpop.eup %3200 }
 0x696   :  { %2346 = vmatmul.mubr.f32.vlgmr.msra.gmra.mrb[14].mxu0 %v3201_v32  ;;  %2389 = vmatprep.mubr.f32.mxu1 %v3201_v32 }
 0x697   :  { %2965 = vmatpush3.bf16.msra.mxu0 %v3723_v62  ;;  %2424 = vmatprep.mubr.msk.f32.mxu0 %vm3321_vm0, %v3322_v1 }
 0x698   :  { %2966 = vmatprep.subr.bf16.mxu0 %v3320_v0 }
 0x69b   :  { %2968 = vmatpush3.bf16.msra.mxu0 %v3727_v3 }
 0x69c   :  { %2969 = vmatprep.subr.bf16.mxu0 %v3320_v0 }
 0x69f   :  { %2971 = vmatpush3.bf16.msra.mxu0 %v3731_v6 }
 0x6a0   :  { %2972 = vmatprep.subr.bf16.mxu0 %v3320_v0 }
 0x6a3   :  { %2974 = vmatpush3.bf16.msra.mxu0 %v3735_v12 }
 0x6a4   :  { %2975 = vmatprep.subr.bf16.mxu0 %v3320_v0 }
 0x6a7   :  { %2977 = vmatpush3.bf16.msra.mxu0 %v3739_v16 }
 0x6a8   :  { %v3768_v10 = vpop.f32.mrb[8].mxu1  ;;  %2978 = vmatprep.subr.bf16.mxu0 %v3320_v0 }
 0x6a9   :  { %v952_v33 = vpop.f32.mrb[9].mxu1  ;;  %v958_v45 = vadd.f32 %v3768_v10, %v3811_v39 }
 0x6aa   :  { %v953_v40 = vadd.f32 %v3811_v39, %v952_v33  ;;  %v1593_v33 = vld [vmem:[#allocation8 + $0x50] sm:$0xff] }
 0x6ab   :  { %2980 = vmatpush3.bf16.msra.mxu0 %v3743_v19 }
 0x6ac   :  { %v3772_v9 = vpop.f32.mrb[10].mxu1  ;;  %2981 = vmatprep.subr.bf16.mxu0 %v3320_v0 }
 0x6ad   :  { %v3775_v15 = vpop.f32.mrb[11].mxu1  ;;  %v968_v55 = vadd.f32 %v3772_v9, %v3811_v39  ;;  %v1594_v9 = vld [vmem:[#allocation8 + $0x58] sm:$0xff] }
 0x6ae   :  { %v963_v50 = vadd.f32 %v3811_v39, %v3775_v15  ;;  %v3171_v15 = vpack.c.bf16 %v1594_v9, %v1593_v33 }
 0x6af   :  { %2983 = vmatpush3.bf16.msra.mxu0 %v3747_v23 }
 0x6b0   :  { %v3778_v21 = vpop.f32.mrb[12].mxu1  ;;  %2984 = vmatprep.subr.bf16.mxu0 %v3320_v0 }
 0x6b1   :  { %v3781_v28 = vpop.f32.mrb[13].mxu1 }
 0x6b2   :  { %v973_v61 = vadd.f32 %v3811_v39, %v3781_v28  ;;  %v1596_v28 = vld [vmem:[#allocation8 + $0x68] sm:$0xff] }
 0x6b3   :  { %2986 = vmatpush3.bf16.msra.mxu0 %v3751_v26 }
 0x6b4   :  { %3011 = vmatprep.subr.bf16.mxu0 %v3320_v0 }
 0x6b6   :  { %2425 = vmatmul.mubr.f32.vlgmr.msra.gmra.mrb[16].mxu0 %v3322_v1 }
 0x6b7   :  { %3013 = vmatpush3.bf16.msra.mxu0 %v3723_v62  ;;  %2494 = vmatprep.mubr.msk.f32.mxu0 %vm3321_vm0, %v3322_v1 }
 0x6b8   :  { %3014 = vmatprep.subr.bf16.mxu0 %v3320_v0 }
 0x6bb   :  { %3016 = vmatpush3.bf16.msra.mxu0 %v3727_v3 }
 0x6bc   :  { %3017 = vmatprep.subr.bf16.mxu0 %v3320_v0 }
 0x6bf   :  { %3019 = vmatpush3.bf16.msra.mxu0 %v3731_v6 }
 0x6c0   :  { %3020 = vmatprep.subr.bf16.mxu0 %v3320_v0 }
 0x6c3   :  { %3022 = vmatpush3.bf16.msra.mxu0 %v3735_v12 }
 0x6c4   :  { %3023 = vmatprep.subr.bf16.mxu0 %v3320_v0 }
 0x6c7   :  { %3025 = vmatpush3.bf16.msra.mxu0 %v3739_v16 }
 0x6c8   :  { %3026 = vmatprep.subr.bf16.mxu0 %v3320_v0 }
 0x6cb   :  { %3028 = vmatpush3.bf16.msra.mxu0 %v3743_v19 }
 0x6cc   :  { %3029 = vmatprep.subr.bf16.mxu0 %v3320_v0 }
 0x6cf   :  { %3031 = vmatpush3.bf16.msra.mxu0 %v3747_v23 }
 0x6d0   :  { %3032 = vmatprep.subr.bf16.mxu0 %v3320_v0 }
 0x6d3   :  { %3034 = vmatpush3.bf16.msra.mxu0 %v3751_v26 }
 0x6d4   :  { %3059 = vmatprep.subr.bf16.mxu0 %v3320_v0 }
 0x769   :  { %v832_v35 = vpop.f32.mrb[14].mxu0 }
 0x76a   :  { %v836_v36 = vadd.f32 %v832_v35, %v236_v34  ;;  %v2347_v37 = vpop.f32.mrb[15].mxu0  ;;  %v1597_v35 = vld [vmem:[#allocation8 + $0x70] sm:$0xff] }
 0x76c   :  { %3202 = vtanh.f32 %v836_v36  ;;  %v1598_v36 = vld [vmem:[#allocation8 + $0x78] sm:$0xff] }
 0x76d   :  { %v3177_v37 = vpack.c.bf16 %v1598_v36, %v1597_v35 }
 0x776   :  { %v3203_v38 = vpop.eup %3202 }
 0x777   :  { %2390 = vmatmul.mubr.f32.gmra.mrb[14].mxu1 %v3203_v38 }
 0x778   :  { %2459 = vmatprep.mubr.msk.f32.mxu1 %vm3321_vm0, %v3322_v1 }
 0x789   :  { %v1066_v41 = vpop.f32.mrb[16].mxu0 }
 0x78a   :  { %v1070_v42 = vadd.f32 %v1066_v41, %v953_v40  ;;  %v2426_v43 = vpop.f32.mrb[17].mxu0 }
 0x78c   :  { %3204 = vtanh.f32 %v1070_v42 }
 0x796   :  { %v3205_v58 = vpop.eup %3204 }
 0x797   :  { %2460 = vmatmul.mubr.f32.vlgmr.msra.gmra.mrb[16].mxu1 %v3205_v58  ;;  %v1686_v58 = vld [vmem:[%s3944_s8] ss:$0 sm:$0xff] }
 0x798   :  { %3037 = vmatpush3.bf16.msra.mxu1 %v3723_v62  ;;  %2529 = vmatprep.mubr.msk.f32.mxu1 %vm3321_vm0, %v3322_v1 }
 0x799   :  { %3038 = vmatprep.subr.bf16.mxu1 %v3320_v0 }
 0x79c   :  { %3040 = vmatpush3.bf16.msra.mxu1 %v3727_v3 }
 0x79d   :  { %3041 = vmatprep.subr.bf16.mxu1 %v3320_v0 }
 0x7a0   :  { %3043 = vmatpush3.bf16.msra.mxu1 %v3731_v6 }
 0x7a1   :  { %3044 = vmatprep.subr.bf16.mxu1 %v3320_v0 }
 0x7a4   :  { %3046 = vmatpush3.bf16.msra.mxu1 %v3735_v12 }
 0x7a5   :  { %3047 = vmatprep.subr.bf16.mxu1 %v3320_v0 }
 0x7a8   :  { %3049 = vmatpush3.bf16.msra.mxu1 %v3739_v16 }
 0x7a9   :  { %3050 = vmatprep.subr.bf16.mxu1 %v3320_v0 }
 0x7ac   :  { %3052 = vmatpush3.bf16.msra.mxu1 %v3743_v19 }
 0x7ad   :  { %3053 = vmatprep.subr.bf16.mxu1 %v3320_v0 }
 0x7b0   :  { %3055 = vmatpush3.bf16.msra.mxu1 %v3747_v23 }
 0x7b1   :  { %3056 = vmatprep.subr.bf16.mxu1 %v3320_v0 }
 0x7b4   :  { %3058 = vmatpush3.bf16.msra.mxu1 %v3751_v26 }
 0x7b5   :  { %3083 = vmatprep.subr.bf16.mxu1 %v3320_v0 }
 0x84a   :  { %v3832_v8 = vpop.f32.mrb[14].mxu1 }
 0x84b   :  { %v3834_v44 = vpop.f32.mrb[15].mxu1  ;;  %v988_v38 = vadd.f32 %v3832_v8, %v3811_v39 }
 0x84c   :  { %v983_v29 = vadd.f32 %v3811_v39, %v3834_v44 }
 0x86a   :  { %v1139_v46 = vpop.f32.mrb[16].mxu1 }
 0x86b   :  { %v1143_v47 = vadd.f32 %v1139_v46, %v958_v45  ;;  %v2461_v48 = vpop.f32.mrb[17].mxu1 }
 0x86d   :  { %3206 = vtanh.f32 %v1143_v47 }
 0x877   :  { %v3207_v49 = vpop.eup %3206 }
 0x878   :  { %2495 = vmatmul.mubr.f32.vlgmr.msra.gmra.mrb[18].mxu0 %v3207_v49 }
 0x879   :  { %3061 = vmatpush3.bf16.msra.mxu0 %v3723_v62  ;;  %2564 = vmatprep.mubr.msk.f32.mxu0 %vm3321_vm0, %v3322_v1 }
 0x87a   :  { %3062 = vmatprep.subr.bf16.mxu0 %v3320_v0 }
 0x87d   :  { %3064 = vmatpush3.bf16.msra.mxu0 %v3727_v3 }
 0x87e   :  { %3065 = vmatprep.subr.bf16.mxu0 %v3320_v0 }
 0x881   :  { %3067 = vmatpush3.bf16.msra.mxu0 %v3731_v6 }
 0x882   :  { %3068 = vmatprep.subr.bf16.mxu0 %v3320_v0 }
 0x885   :  { %3070 = vmatpush3.bf16.msra.mxu0 %v3735_v12 }
 0x886   :  { %3071 = vmatprep.subr.bf16.mxu0 %v3320_v0 }
 0x889   :  { %3073 = vmatpush3.bf16.msra.mxu0 %v3739_v16 }
 0x88a   :  { %3074 = vmatprep.subr.bf16.mxu0 %v3320_v0 }
 0x88d   :  { %3076 = vmatpush3.bf16.msra.mxu0 %v3743_v19 }
 0x88e   :  { %3077 = vmatprep.subr.bf16.mxu0 %v3320_v0 }
 0x891   :  { %3079 = vmatpush3.bf16.msra.mxu0 %v3747_v23 }
 0x892   :  { %3080 = vmatprep.subr.bf16.mxu0 %v3320_v0 }
 0x895   :  { %3082 = vmatpush3.bf16.msra.mxu0 %v3751_v26 }
 0x896   :  { %3107 = vmatprep.subr.bf16.mxu0 %v3320_v0 }
 0x94b   :  { %v1212_v51 = vpop.f32.mrb[18].mxu0 }
 0x94c   :  { %v1216_v52 = vadd.f32 %v1212_v51, %v963_v50  ;;  %v2496_v53 = vpop.f32.mrb[19].mxu0 }
 0x94e   :  { %3208 = vtanh.f32 %v1216_v52 }
 0x958   :  { %v3209_v54 = vpop.eup %3208 }
 0x959   :  { %2530 = vmatmul.mubr.f32.vlgmr.msra.gmra.mrb[18].mxu1 %v3209_v54 }
 0x95a   :  { %3085 = vmatpush3.bf16.msra.mxu1 %v3723_v62  ;;  %2599 = vmatprep.mubr.msk.f32.mxu1 %vm3321_vm0, %v3322_v1 }
 0x95b   :  { %3086 = vmatprep.subr.bf16.mxu1 %v3320_v0 }
 0x95e   :  { %3088 = vmatpush3.bf16.msra.mxu1 %v3727_v3 }
 0x95f   :  { %3089 = vmatprep.subr.bf16.mxu1 %v3320_v0 }
 0x962   :  { %3091 = vmatpush3.bf16.msra.mxu1 %v3731_v6 }
 0x963   :  { %3092 = vmatprep.subr.bf16.mxu1 %v3320_v0 }
 0x966   :  { %3094 = vmatpush3.bf16.msra.mxu1 %v3735_v12 }
 0x967   :  { %3095 = vmatprep.subr.bf16.mxu1 %v3320_v0 }
 0x96a   :  { %3097 = vmatpush3.bf16.msra.mxu1 %v3739_v16 }
 0x96b   :  { %3098 = vmatprep.subr.bf16.mxu1 %v3320_v0 }
 0x96e   :  { %3100 = vmatpush3.bf16.msra.mxu1 %v3743_v19 }
 0x96f   :  { %3101 = vmatprep.subr.bf16.mxu1 %v3320_v0 }
 0x972   :  { %3103 = vmatpush3.bf16.msra.mxu1 %v3747_v23 }
 0x973   :  { %3104 = vmatprep.subr.bf16.mxu1 %v3320_v0 }
 0x976   :  { %3106 = vmatpush3.bf16.msra.mxu1 %v3751_v26 }
 0x977   :  { %3131 = vmatprep.subr.bf16.mxu1 %v3320_v0 }
 0xa2c   :  { %v1285_v56 = vpop.f32.mrb[18].mxu1 }
 0xa2d   :  { %v1289_v57 = vadd.f32 %v1285_v56, %v968_v55  ;;  %v2531_v59 = vpop.f32.mrb[19].mxu1 }
 0xa2f   :  { %3210 = vtanh.f32 %v1289_v57 }
 0xa39   :  { %v3211_v60 = vpop.eup %3210 }
 0xa3a   :  { %2565 = vmatmul.mubr.f32.vlgmr.msra.gmra.mrb[20].mxu0 %v3211_v60 }
 0xa3b   :  { %3109 = vmatpush3.bf16.msra.mxu0 %v3723_v62  ;;  %2634 = vmatprep.mubr.msk.f32.mxu0 %vm3321_vm0, %v3322_v1 }
 0xa3c   :  { %3110 = vmatprep.subr.bf16.mxu0 %v3320_v0 }
 0xa3f   :  { %3112 = vmatpush3.bf16.msra.mxu0 %v3727_v3 }
 0xa40   :  { %3113 = vmatprep.subr.bf16.mxu0 %v3320_v0 }
 0xa43   :  { %3115 = vmatpush3.bf16.msra.mxu0 %v3731_v6 }
 0xa44   :  { %3116 = vmatprep.subr.bf16.mxu0 %v3320_v0 }
 0xa47   :  { %3118 = vmatpush3.bf16.msra.mxu0 %v3735_v12 }
 0xa48   :  { %3119 = vmatprep.subr.bf16.mxu0 %v3320_v0 }
 0xa4b   :  { %3121 = vmatpush3.bf16.msra.mxu0 %v3739_v16 }
 0xa4c   :  { %3122 = vmatprep.subr.bf16.mxu0 %v3320_v0 }
 0xa4f   :  { %3124 = vmatpush3.bf16.msra.mxu0 %v3743_v19 }
 0xa50   :  { %3125 = vmatprep.subr.bf16.mxu0 %v3320_v0 }
 0xa53   :  { %3127 = vmatpush3.bf16.msra.mxu0 %v3747_v23 }
 0xa54   :  { %3128 = vmatprep.subr.bf16.mxu0 %v3320_v0 }
 0xa57   :  { %3130 = vmatpush3.bf16.msra.mxu0 %v3751_v26 }
 0xa58   :  { %3155 = vmatprep.subr.bf16.mxu0 %v3320_v0 }
 0xb0d   :  { %v1358_v63 = vpop.f32.mrb[20].mxu0 }
 0xb0e   :  { %v1362_v2 = vadd.f32 %v1358_v63, %v973_v61  ;;  %v2566_v4 = vpop.f32.mrb[21].mxu0 }
 0xb10   :  { %3212 = vtanh.f32 %v1362_v2 }
 0xb1a   :  { %v3213_v5 = vpop.eup %3212 }
 0xb1b   :  { %2600 = vmatmul.mubr.f32.vlgmr.msra.gmra.mrb[20].mxu1 %v3213_v5 }
 0xb1c   :  { %3133 = vmatpush3.bf16.msra.mxu1 %v3723_v62  ;;  %2669 = vmatprep.mubr.msk.f32.mxu1 %vm3321_vm0, %v3322_v1  ;;  %v978_v62 = vadd.f32 %v3778_v21, %v3811_v39  ;;  %v1595_v21 = vld [vmem:[#allocation8 + $0x60] sm:$0xff] }
 0xb1d   :  { %3134 = vmatprep.subr.bf16.mxu1 %v3320_v0  ;;  %v3174_v34 = vpack.c.bf16 %v1596_v28, %v1595_v21 }
 0xb20   :  { %3136 = vmatpush3.bf16.msra.mxu1 %v3727_v3 }
 0xb21   :  { %3137 = vmatprep.subr.bf16.mxu1 %v3320_v0 }
 0xb24   :  { %3139 = vmatpush3.bf16.msra.mxu1 %v3731_v6 }
 0xb25   :  { %3140 = vmatprep.subr.bf16.mxu1 %v3320_v0 }
 0xb28   :  { %3142 = vmatpush3.bf16.msra.mxu1 %v3735_v12  ;;  %v1583_v12 = vld [vmem:[#allocation8] sm:$0xff] }
 0xb29   :  { %3143 = vmatprep.subr.bf16.mxu1 %v3320_v0 }
 0xb2c   :  { %3145 = vmatpush3.bf16.msra.mxu1 %v3739_v16  ;;  %v3156_v16 = vpack.c.bf16 %v1584_v13, %v1583_v12 }
 0xb2d   :  { %3146 = vmatprep.subr.bf16.mxu1 %v3320_v0 }
 0xb30   :  { %3148 = vmatpush3.bf16.msra.mxu1 %v3743_v19  ;;  %v1587_v19 = vld [vmem:[#allocation8 + $0x20] sm:$0xff] }
 0xb31   :  { %3149 = vmatprep.subr.bf16.mxu1 %v3320_v0  ;;  %v3162_v22 = vpack.c.bf16 %v1588_v20, %v1587_v19 }
 0xb34   :  { %3151 = vmatpush3.bf16.msra.mxu1 %v3747_v23  ;;  %v1589_v23 = vld [vmem:[#allocation8 + $0x30] sm:$0xff] }
 0xb35   :  { %3152 = vmatprep.subr.bf16.mxu1 %v3320_v0  ;;  %v3165_v25 = vpack.c.bf16 %v1590_v24, %v1589_v23 }
 0xb38   :  { %3154 = vmatpush3.bf16.msra.mxu1 %v3751_v26  ;;  %v1592_v26 = vld [vmem:[#allocation8 + $0x48] sm:$0xff] }
 0xbee   :  { %v1431_v3 = vpop.f32.mrb[20].mxu1 }
 0xbef   :  { %v1435_v6 = vadd.f32 %v1431_v3, %v978_v62  ;;  %v2601_v7 = vpop.f32.mrb[21].mxu1 }
 0xbf1   :  { %3214 = vtanh.f32 %v1435_v6 }
 0xbfb   :  { %v3215_v11 = vpop.eup %3214 }
 0xbfc   :  { %2635 = vmatmul.mubr.f32.vlgmr.msra.gmra.mrb[22].mxu0 %v3215_v11 }
 0xbfd   :  { %2704 = vmatprep.mubr.msk.f32.mxu0 %vm3321_vm0, %v3322_v1  ;;  %3157 = vmatpush3.bf16.msra.mxu0 %v3156_v16  ;;  %v1591_v1 = vld [vmem:[#allocation8 + $0x40] sm:$0xff] }
 0xbfe   :  { %3158 = vmatprep.subr.bf16.mxu0 %v3320_v0  ;;  %v3168_v27 = vpack.c.bf16 %v1592_v26, %v1591_v1 }
 0xc01   :  { %3160 = vmatpush3.bf16.msra.mxu0 %v3159_v18 }
 0xc02   :  { %3161 = vmatprep.subr.bf16.mxu0 %v3320_v0 }
 0xc05   :  { %3163 = vmatpush3.bf16.msra.mxu0 %v3162_v22 }
 0xc06   :  { %3164 = vmatprep.subr.bf16.mxu0 %v3320_v0 }
 0xc09   :  { %3166 = vmatpush3.bf16.msra.mxu0 %v3165_v25 }
 0xc0a   :  { %3167 = vmatprep.subr.bf16.mxu0 %v3320_v0 }
 0xc0d   :  { %3169 = vmatpush3.bf16.msra.mxu0 %v3168_v27 }
 0xc0e   :  { %3170 = vmatprep.subr.bf16.mxu0 %v3320_v0 }
 0xc11   :  { %3172 = vmatpush3.bf16.msra.mxu0 %v3171_v15 }
 0xc12   :  { %3173 = vmatprep.subr.bf16.mxu0 %v3320_v0 }
 0xc15   :  { %3175 = vmatpush3.bf16.msra.mxu0 %v3174_v34 }
 0xc16   :  { %3176 = vmatprep.subr.bf16.mxu0 %v3320_v0 }
 0xc19   :  { %3178 = vmatpush3.bf16.msra.mxu0 %v3177_v37 }
 0xccf   :  { %v1504_v30 = vpop.f32.mrb[22].mxu0 }
 0xcd0   :  { %v1508_v31 = vadd.f32 %v1504_v30, %v983_v29  ;;  %v2636_v32 = vpop.f32.mrb[23].mxu0 }
 0xcd2   :  { %3216 = vtanh.f32 %v1508_v31 }
 0xcdc   :  { %v3217_v10 = vpop.eup %3216 }
 0xcdd   :  { %2670 = vmatmul.mubr.f32.vlgmr.msra.gmra.mrb[22].mxu1 %v3217_v10 }
 0xdb0   :  { %v1577_v40 = vpop.f32.mrb[22].mxu1 }
 0xdb1   :  { %v1581_v41 = vadd.f32 %v1577_v40, %v988_v38  ;;  %v2671_v42 = vpop.f32.mrb[23].mxu1 }
 0xdb3   :  { %3218 = vtanh.f32 %v1581_v41 }
 0xdbd   :  { %v3219_v43 = vpop.eup %3218 }
 0xdbe   :  { %2705 = vmatmul.mubr.f32.vlgmr.msra.gmra.mrb[24].mxu0 %v3219_v43 }
 0xe91   :  { %v1672_v44 = vpop.f32.mrb[24].mxu0 }
 0xe92   :  { %v1673_v45 = vadd.f32 %v1686_v58, %v1672_v44  ;;  %v2706_v46 = vpop.f32.mrb[25].mxu0 }
 0xe94   :  { %1676 = vst [vmem:[%s3945_s9] sm:$0xff] %v1673_v45 }
 0xe95   :  { %1681 = vsyncpa [#allocation4], 1 }
 0xe96   :  { %1682 = vsyncpa [#allocation6], 1 }
 0xe97   :  { %1683 = vsyncpa [#allocation9], 1 }

</bundles_post_ra>
